<compile_context>
chip_gen: v5e
topology: v5e:2x2
jax: 0.10.0
libtpu: 0.0.40
codegen_flags: <defaults>
</compile_context>

<pallas_src>
import functools

import jax
import jax.numpy as jnp
from jax.experimental import pallas as pl
from jax.experimental.pallas import tpu as pltpu

LANES = 128      # lane width every packed operand is padded to
V_HIDDEN = 12    # VNet hidden size (fixed by the PyTorch module)


# ----------------------------------------------------------------------------- kernel
def net_kernel(x_ref, w_ref, b_ref, out_ref, *, v_hidden, n_input, n_output):
    """One batch tile.

    x_ref:   (TB, n_input)     f32   narrow HBM stream (padded to 128 lanes here)
    w_ref:   (3, 128, 128)     bf16  packed fused/block-diag weight slab (resident)
    b_ref:   (3, 128)          f32   packed bias slab (resident)
    out_ref: (TB, 2*n_output)  f32   lanes [0:n_out) = u*x, [n_out:2*n_out) = v
    """
    xin = x_ref[...]                                              # (TB, n_in) f32
    tb = xin.shape[0]

    # Zero-pad to a full 128-lane MXU operand inside VMEM (no inflated HBM stream).
    x = jnp.concatenate(
        [xin, jnp.zeros((tb, LANES - n_input), jnp.float32)], axis=1)   # (TB, 128)
    lane = jax.lax.broadcasted_iota(jnp.int32, (tb, LANES), 1)          # (TB, 128)

    def fused_act(z):
        # lanes [0:v_hidden) -> VNet branch (tanh, EUP slot);
        # lanes [v_hidden:)  -> ControlNet branch (relu, VPU slot);
        # padded lanes are 0 either way.
        return jnp.where(lane < v_hidden, jnp.tanh(z), jnp.maximum(z, 0.0))

    def dot_bf16(h, k):
        # bf16 x bf16 MXU matmul with f32 accumulation.
        return jnp.dot(h.astype(jnp.bfloat16), w_ref[k],
                       preferred_element_type=jnp.float32)

    # layer 1: fused (n_input -> 12 + n_hidden), zero-padded to 128x128
    z1 = dot_bf16(x, 0) + b_ref[0:1, :]
    h1 = fused_act(z1)
    # layer 2: block-diagonal (VNet block | ControlNet block)
    z2 = dot_bf16(h1, 1) + b_ref[1:2, :]
    h2 = fused_act(z2)
    # layer 3: block-diagonal, emits [u | v | 0...] along lanes
    z3 = dot_bf16(h2, 2) + b_ref[2:3, :]

    # u occupies lanes [0:n_input) -- exactly where x sits in the padded operand,
    # so u*x is a single lane-masked multiply (f32); v and padding pass through.
    mult = jnp.where(lane < n_input, x, 1.0)
    out_ref[...] = (z3 * mult)[:, :2 * n_output].astype(out_ref.dtype)


# ----------------------------------------------------------------------------- wrapper
def net_forward(x, wslab, bslab, *, n_input, n_output, tile_b=512):
    """x: (B, n_input) f32. Returns (v: (B, n_output), u*x: (B, n_input))."""
    assert x.shape[1] == n_input
    assert n_input == n_output, "u * x in the reference module requires n_output == n_input"
    B = x.shape[0]

    # round batch up to a multiple of the tile (zero rows are discarded after)
    n_tiles = pl.cdiv(B, tile_b)
    Bp = n_tiles * tile_b
    x = x.astype(jnp.float32)
    if Bp != B:
        x = jnp.concatenate([x, jnp.zeros((Bp - B, n_input), jnp.float32)], axis=0)

    kernel = functools.partial(net_kernel, v_hidden=V_HIDDEN,
                               n_input=n_input, n_output=n_output)

    bytes_accessed = (x.size * 4 + wslab.size * 2 + bslab.size * 4
                      + Bp * 2 * n_output * 4)
    out = pl.pallas_call(
        kernel,
        out_shape=jax.ShapeDtypeStruct((Bp, 2 * n_output), jnp.float32),
        grid=(n_tiles,),
        in_specs=[
            # streamed batch tile (narrow: last dim == full array dim)
            pl.BlockSpec((tile_b, n_input), lambda i: (i, 0)),
            # weight / bias slabs: constant block index -> fetched once, resident
            pl.BlockSpec((3, LANES, LANES), lambda i: (0, 0, 0)),
            pl.BlockSpec((3, LANES), lambda i: (0, 0)),
        ],
        out_specs=pl.BlockSpec((tile_b, 2 * n_output), lambda i: (i, 0)),
        compiler_params=pltpu.CompilerParams(
            # batch tiles are independent -> shard across v7x's 2 TensorCores
            dimension_semantics=("parallel",),
        ),
        cost_estimate=pl.CostEstimate(
            flops=2 * Bp * LANES * LANES * 3,
            transcendentals=2 * Bp * LANES,
            bytes_accessed=bytes_accessed,
        ),
    )(x, wslab, bslab)

    ux = out[:B, :n_output]
    v = out[:B, n_output:2 * n_output]
    return v, ux


# ----------------------------------------------------------------------------- params
def init_params(key, n_input, n_hidden, n_output, v_hidden=V_HIDDEN):
    """Deterministic synthetic init (PyTorch-Linear-style uniform fan-in scaling)."""
    def linear(key, fan_in, fan_out):
        k1, k2 = jax.random.split(key)
        bound = 1.0 / jnp.sqrt(jnp.float32(fan_in))
        w = jax.random.uniform(k1, (fan_in, fan_out), jnp.float32, -bound, bound)
        b = jax.random.uniform(k2, (fan_out,), jnp.float32, -bound, bound)
        return w, b

    keys = jax.random.split(key, 6)
    vw1, vb1 = linear(keys[0], n_input, v_hidden)
    vw2, vb2 = linear(keys[1], v_hidden, v_hidden)
    vw3, vb3 = linear(keys[2], v_hidden, n_output)
    cw1, cb1 = linear(keys[3], n_input, n_hidden)
    cw2, cb2 = linear(keys[4], n_hidden, n_hidden)
    cw3, cb3 = linear(keys[5], n_hidden, n_output)
    return dict(vw1=vw1, vb1=vb1, vw2=vw2, vb2=vb2, vw3=vw3, vb3=vb3,
                cw1=cw1, cb1=cb1, cw2=cw2, cb2=cb2, cw3=cw3, cb3=cb3)


def pack_params(p, n_input, n_hidden, n_output, v_hidden=V_HIDDEN):
    """Pack the 12 small tensors into one bf16 weight slab and one f32 bias slab.

    Weight slab: (3, 128, 128) bf16
      [0] fused layer-1:   vw1 | cw1 concatenated along lanes
      [1] block-diag L2:   vw2 at [0:12,0:12], cw2 at [12:H,12:H]
      [2] block-diag L3:   cw3 -> lanes [0:n_out)  (u),  vw3 -> lanes [n_out:2*n_out)  (v)
    Bias slab: (3, 128) f32, same lane layout as each layer's output.
    """
    H = v_hidden + n_hidden
    assert H <= LANES and 2 * n_output <= LANES and n_input <= LANES

    W1 = jnp.zeros((LANES, LANES), jnp.float32)
    W1 = W1.at[:n_input, :H].set(jnp.concatenate([p["vw1"], p["cw1"]], axis=1))

    W2 = jnp.zeros((LANES, LANES), jnp.float32)
    W2 = W2.at[:v_hidden, :v_hidden].set(p["vw2"])
    W2 = W2.at[v_hidden:H, v_hidden:H].set(p["cw2"])

    W3 = jnp.zeros((LANES, LANES), jnp.float32)
    W3 = W3.at[v_hidden:H, :n_output].set(p["cw3"])                      # u block
    W3 = W3.at[:v_hidden, n_output:2 * n_output].set(p["vw3"])           # v block

    wslab = jnp.stack([W1, W2, W3], axis=0).astype(jnp.bfloat16)         # (3,128,128) bf16

    B1 = jnp.zeros((LANES,), jnp.float32).at[:H].set(
        jnp.concatenate([p["vb1"], p["cb1"]]))
    B2 = jnp.zeros((LANES,), jnp.float32).at[:H].set(
        jnp.concatenate([p["vb2"], p["cb2"]]))
    B3 = jnp.zeros((LANES,), jnp.float32)
    B3 = B3.at[:n_output].set(p["cb3"])
    B3 = B3.at[n_output:2 * n_output].set(p["vb3"])
    bslab = jnp.stack([B1, B2, B3], axis=0)                              # (3, 128) f32

    return wslab, bslab


def net_reference(x, p):
    """Pure-JAX f32 reference for correctness checking."""
    h = jnp.tanh(x @ p["vw1"] + p["vb1"])
    h = jnp.tanh(h @ p["vw2"] + p["vb2"])
    v = h @ p["vw3"] + p["vb3"]
    g = jnp.maximum(x @ p["cw1"] + p["cb1"], 0.0)
    g = jnp.maximum(g @ p["cw2"] + p["cb2"], 0.0)
    u = g @ p["cw3"] + p["cb3"]
    return v, u * x


# ----------------------------------------------------------------------------- main
if __name__ == "__main__":
    # Lorenz system: 3 state dims; control output must match input dim for u * x.
    # Trajectory-style batch so the batched/tiled regime is exercised (data is
    # still tiny: 2048 x 3 f32 = 24 KiB).
    n_input, n_hidden, n_output = 3, 32, 3
    batch = 2048
    tile_b = 512

    key = jax.random.PRNGKey(0)
    kx, kp = jax.random.split(key)
    x = jax.random.normal(kx, (batch, n_input), dtype=jnp.float32)
    params = init_params(kp, n_input, n_hidden, n_output)
    wslab, bslab = pack_params(params, n_input, n_hidden, n_output)

    v, ux = net_forward(x, wslab, bslab, n_input=n_input, n_output=n_output,
                        tile_b=tile_b)
    jax.block_until_ready((v, ux))

    v_ref, ux_ref = net_reference(x, params)
    assert v.shape == (batch, n_output) and ux.shape == (batch, n_input)
    # bf16 weights + bf16 MXU inputs (f32 accumulation) -> relaxed tolerance
    # against the f32 reference.
    assert jnp.allclose(v, v_ref, atol=5e-2, rtol=5e-2), \
        float(jnp.max(jnp.abs(v - v_ref)))
    assert jnp.allclose(ux, ux_ref, atol=5e-2, rtol=5e-2), \
        float(jnp.max(jnp.abs(ux - ux_ref)))

    print("KERNEL_OK")
</pallas_src>

<mosaic_0001>
module attributes {stable_mosaic.version = 11 : i64} {
  func.func @net_kernel(%arg0: i32, %arg1: memref<512x3xf32, #tpu.memory_space<vmem>>, %arg2: memref<3x128x128xbf16, #tpu.memory_space<vmem>>, %arg3: memref<3x128xf32, #tpu.memory_space<vmem>>, %arg4: memref<512x6xf32, #tpu.memory_space<vmem>>) attributes {dimension_semantics = [#tpu.dimension_semantics<parallel>], iteration_bounds = array<i64: 4>, scalar_prefetch = 0 : i64, scratch_operands = 0 : i64, tpu.core_type = #tpu.core_type<tc>, window_params = [{transform_indices = @transform_0, window_bounds = array<i64: 512, 3>}, {pipeline_mode = #tpu.pipeline_mode<synchronous>, transform_indices = @transform_1, window_bounds = array<i64: 3, 128, 128>}, {pipeline_mode = #tpu.pipeline_mode<synchronous>, transform_indices = @transform_2, window_bounds = array<i64: 3, 128>}, {transform_indices = @transform_3, window_bounds = array<i64: 512, 6>}]} {
    %c0 = arith.constant 0 : index
    %c0_0 = arith.constant 0 : index
    %0 = vector.load %arg1[%c0, %c0_0] : memref<512x3xf32, #tpu.memory_space<vmem>>, vector<512x3xf32>
    %cst = arith.constant 0.000000e+00 : f32
    %1 = vector.broadcast %cst : f32 to vector<512x125xf32>
    %2 = tpu.concatenate %0, %1 in 1 : vector<512x3xf32>, vector<512x125xf32> -> vector<512x128xf32>
    %3 = tpu.iota {dimensions = array<i32: 1>} : vector<512x128xi32>
    %4 = arith.truncf %2 : vector<512x128xf32> to vector<512x128xbf16>
    %c0_1 = arith.constant 0 : index
    %c0_2 = arith.constant 0 : index
    %c0_3 = arith.constant 0 : index
    %5 = vector.load %arg2[%c0_1, %c0_2, %c0_3] : memref<3x128x128xbf16, #tpu.memory_space<vmem>>, vector<1x128x128xbf16>
    %6 = vector.shape_cast %5 : vector<1x128x128xbf16> to vector<128x128xbf16>
    %cst_4 = arith.constant dense<0.000000e+00> : vector<512x128xf32>
    %7 = tpu.matmul %4, %6, %cst_4 {dimension_numbers = #tpu.dot_dimension_numbers<[1], [0], [0], [1], [0, 0, 1, 1], [], []>} : vector<512x128xbf16>, vector<128x128xbf16>, vector<512x128xf32> -> vector<512x128xf32>
    %c0_5 = arith.constant 0 : index
    %c0_6 = arith.constant 0 : index
    %8 = vector.load %arg3[%c0_5, %c0_6] : memref<3x128xf32, #tpu.memory_space<vmem>>, vector<1x128xf32>
    %9 = vector.broadcast %8 : vector<1x128xf32> to vector<512x128xf32>
    %10 = arith.addf %7, %9 : vector<512x128xf32>
    %c12_i32 = arith.constant 12 : i32
    %11 = vector.broadcast %c12_i32 : i32 to vector<512x128xi32>
    %12 = arith.cmpi slt, %3, %11 : vector<512x128xi32>
    %13 = math.tanh %10 : vector<512x128xf32>
    %cst_7 = arith.constant 0.000000e+00 : f32
    %14 = vector.broadcast %cst_7 : f32 to vector<512x128xf32>
    %15 = arith.maximumf %10, %14 : vector<512x128xf32>
    %16 = arith.select %12, %13, %15 : vector<512x128xi1>, vector<512x128xf32>
    %17 = arith.truncf %16 : vector<512x128xf32> to vector<512x128xbf16>
    %c1 = arith.constant 1 : index
    %c0_8 = arith.constant 0 : index
    %c0_9 = arith.constant 0 : index
    %18 = vector.load %arg2[%c1, %c0_8, %c0_9] : memref<3x128x128xbf16, #tpu.memory_space<vmem>>, vector<1x128x128xbf16>
    %19 = vector.shape_cast %18 : vector<1x128x128xbf16> to vector<128x128xbf16>
    %cst_10 = arith.constant dense<0.000000e+00> : vector<512x128xf32>
    %20 = tpu.matmul %17, %19, %cst_10 {dimension_numbers = #tpu.dot_dimension_numbers<[1], [0], [0], [1], [0, 0, 1, 1], [], []>} : vector<512x128xbf16>, vector<128x128xbf16>, vector<512x128xf32> -> vector<512x128xf32>
    %c1_11 = arith.constant 1 : index
    %c0_12 = arith.constant 0 : index
    %21 = vector.load %arg3[%c1_11, %c0_12] : memref<3x128xf32, #tpu.memory_space<vmem>>, vector<1x128xf32>
    %22 = vector.broadcast %21 : vector<1x128xf32> to vector<512x128xf32>
    %23 = arith.addf %20, %22 : vector<512x128xf32>
    %c12_i32_13 = arith.constant 12 : i32
    %24 = vector.broadcast %c12_i32_13 : i32 to vector<512x128xi32>
    %25 = arith.cmpi slt, %3, %24 : vector<512x128xi32>
    %26 = math.tanh %23 : vector<512x128xf32>
    %cst_14 = arith.constant 0.000000e+00 : f32
    %27 = vector.broadcast %cst_14 : f32 to vector<512x128xf32>
    %28 = arith.maximumf %23, %27 : vector<512x128xf32>
    %29 = arith.select %25, %26, %28 : vector<512x128xi1>, vector<512x128xf32>
    %30 = arith.truncf %29 : vector<512x128xf32> to vector<512x128xbf16>
    %c2 = arith.constant 2 : index
    %c0_15 = arith.constant 0 : index
    %c0_16 = arith.constant 0 : index
    %31 = vector.load %arg2[%c2, %c0_15, %c0_16] : memref<3x128x128xbf16, #tpu.memory_space<vmem>>, vector<1x128x128xbf16>
    %32 = vector.shape_cast %31 : vector<1x128x128xbf16> to vector<128x128xbf16>
    %cst_17 = arith.constant dense<0.000000e+00> : vector<512x128xf32>
    %33 = tpu.matmul %30, %32, %cst_17 {dimension_numbers = #tpu.dot_dimension_numbers<[1], [0], [0], [1], [0, 0, 1, 1], [], []>} : vector<512x128xbf16>, vector<128x128xbf16>, vector<512x128xf32> -> vector<512x128xf32>
    %c2_18 = arith.constant 2 : index
    %c0_19 = arith.constant 0 : index
    %34 = vector.load %arg3[%c2_18, %c0_19] : memref<3x128xf32, #tpu.memory_space<vmem>>, vector<1x128xf32>
    %35 = vector.broadcast %34 : vector<1x128xf32> to vector<512x128xf32>
    %36 = arith.addf %33, %35 : vector<512x128xf32>
    %c3_i32 = arith.constant 3 : i32
    %37 = vector.broadcast %c3_i32 : i32 to vector<512x128xi32>
    %38 = arith.cmpi slt, %3, %37 : vector<512x128xi32>
    %cst_20 = arith.constant 1.000000e+00 : f32
    %39 = vector.broadcast %cst_20 : f32 to vector<512x128xf32>
    %40 = arith.select %38, %2, %39 : vector<512x128xi1>, vector<512x128xf32>
    %41 = arith.mulf %36, %40 : vector<512x128xf32>
    %42 = vector.extract_strided_slice %41 {offsets = [0, 0], sizes = [512, 6], strides = [1, 1]} : vector<512x128xf32> to vector<512x6xf32>
    %c0_21 = arith.constant 0 : index
    %c0_22 = arith.constant 0 : index
    %43 = vector.load %arg4[%c0_21, %c0_22] : memref<512x6xf32, #tpu.memory_space<vmem>>, vector<512x6xf32>
    tpu.vector_store %arg4[%c0_21, %c0_22], %42 {strides = array<i32>} : memref<512x6xf32, #tpu.memory_space<vmem>>, vector<512x6xf32>,
    return
  }
  func.func @transform_0(%arg0: i32) -> (i32, i32) {
    %c0_i32 = arith.constant 0 : i32
    %c0_i32_0 = arith.constant 0 : i32
    return %arg0, %c0_i32 : i32, i32
  }
  func.func @transform_1(%arg0: i32) -> (i32, i32, i32) {
    %c0_i32 = arith.constant 0 : i32
    %c0_i32_0 = arith.constant 0 : i32
    %c0_i32_1 = arith.constant 0 : i32
    %c0_i32_2 = arith.constant 0 : i32
    return %c0_i32, %c0_i32_0, %c0_i32_1 : i32, i32, i32
  }
  func.func @transform_2(%arg0: i32) -> (i32, i32) {
    %c0_i32 = arith.constant 0 : i32
    %c0_i32_0 = arith.constant 0 : i32
    %c0_i32_1 = arith.constant 0 : i32
    return %c0_i32, %c0_i32_0 : i32, i32
  }
  func.func @transform_3(%arg0: i32) -> (i32, i32) {
    %c0_i32 = arith.constant 0 : i32
    %c0_i32_0 = arith.constant 0 : i32
    return %arg0, %c0_i32 : i32, i32
  }
}

</mosaic_0001>

<bundles_post_ra>
// kernel: tpu_custom_call.1
= control target key start
LH: loop header
LB: loop body
LE: loop exit
PB: predicated region body
PF: predicated region fallthrough
CT: control target
= control target key end

     0   :  { %s2388_s12 = smov 0   ;;  %s3488_s0 = inlined_call_operand.vmem [shape: f32[2048,3], index: 0, kind: input, shape index: {}]   ;;  %s3489_s1 = inlined_call_operand.vmem [shape: bf16[3,128,128], index: 1, kind: input, shape index: {}]   ;;  %s3490_s2 = inlined_call_operand.vmem [shape: f32[3,128], index: 2, kind: input, shape index: {}]   ;;  %s3491_s3 = inlined_call_operand.vmem [shape: f32[2048,6], index: 3, kind: output, shape index: {}]  }
   0x1 LB: > { %s1743_s13 = sadd.s32 4294967295, %s2366_s12   ;;  %p1747_p0 = scmp.ge.s32.totalorder %s2366_s12, 1  ;;  %s2366_s12 = sphi %s2388_s12, %s13_s12  }
   0x2   : > { %p138_p1 = scmp.lt.s32.totalorder %s2366_s12, 5 }
   0x4   : > { %p139_p2 = pnand %p1747_p0, %p138_p1 }
   0x5   : > { %s1748_s20 = sshll.u32 (!%p139_p2), %s1743_s13, 6 }
   0x6   : > { %142 = sbr.rel (%p139_p2) target bundleno = 849 (0x351), region = 32  ;;  %p163_p3 = scmp.lt.s32.totalorder (!%p139_p2), %s1748_s20, 255 }
   0xb   : > { %v1985_v0 = vld [vmem:[%s3489_s1 + $0x38] sm:$0xff]  ;;  %v1984_v1 = vld [vmem:[%s3489_s1 + $0x30] sm:$0xff]  ;;  %v1983_v2 = vld [vmem:[%s3489_s1 + $0x28] sm:$0xff]  ;;  %s3495_s20 = smov (!%p163_p3, %s1748_s20), 255  ;;  %vm238_vm0 = vcmask 23552   ;;  %v303_v47 = vlaneseq  ;;  %vm1622_vm4 = vcmask 48128  }
   0xc   : > { %403 = vmatpush.bf16.msra.mxu0 %v1985_v0  ;;  %2002 = vmatpush.bf16.msra.mxu3 %v1985_v0  ;;  %v1982_v3 = vld [vmem:[%s3489_s1 + $0x20] sm:$0xff]  ;;  %v1981_v4 = vld [vmem:[%s3489_s1 + $0x18] sm:$0xff]  ;;  %v1980_v5 = vld [vmem:[%s3489_s1 + $0x10] sm:$0xff]  ;;  %s1749_s27 = sshll.u32 %s3495_s20, 3 }
   0xd   : > { %v1979_v6 = vld [vmem:[%s3489_s1 + $0x8] sm:$0xff]  ;;  %s2425_s5 = scalar_lea.vmem %s3488_s0, %s1749_s27  ;;  %v1978_v7 = vld [vmem:[%s3489_s1] sm:$0xff]  ;;  %vm2434_vm1 = vmpackc.low %vm238_vm0, %vm238_vm0  ;;  %v2503_v50 = vand.u32 127, %v303_v47  ;;  %s2850_s30 = scalar_lea.vmem %s3491_s3, %s1749_s27 }
   0xe   : > { %v174_v8 = vld [vmem:[%s2425_s5] sm:$0xff]  ;;  %v175_v9 = vld [vmem:[%s2425_s5 + $0x8] sm:$0xff]  ;;  %v176_v12 = vld [vmem:[%s2425_s5 + $0x10] sm:$0xff] }
   0xf   : > { %v1785_v10 = vpack.c.bf16 %v175_v9, %v174_v8  ;;  %v177_v13 = vld [vmem:[%s2425_s5 + $0x18] sm:$0xff]  ;;  %v178_v15 = vld [vmem:[%s2425_s5 + $0x20] sm:$0xff]  ;;  %v179_v16 = vld [vmem:[%s2425_s5 + $0x28] sm:$0xff]  ;;  %vm572_vm2 = vcmp.lt.s32.totalorder %v2503_v50, 12  ;;  %vm1493_vm3 = vcmp.lt.s32.totalorder %v2503_v50, 3 }
  0x10   : > { %404 = vmatpush.bf16.msra.mxu0 %v1984_v1  ;;  %2003 = vmatpush.bf16.msra.mxu3 %v1984_v1  ;;  %v1788_v14 = vpack.c.bf16 %v177_v13, %v176_v12  ;;  %v1791_v17 = vpack.c.bf16 %v179_v16, %v178_v15  ;;  %v180_v18 = vld [vmem:[%s2425_s5 + $0x30] sm:$0xff]  ;;  %v181_v19 = vld [vmem:[%s2425_s5 + $0x38] sm:$0xff]  ;;  %v182_v21 = vld [vmem:[%s2425_s5 + $0x40] sm:$0xff] }
  0x11   : > { %v1794_v20 = vpack.c.bf16 %v181_v19, %v180_v18  ;;  %v183_v22 = vld [vmem:[%s2425_s5 + $0x48] sm:$0xff]  ;;  %v184_v24 = vld [vmem:[%s2425_s5 + $0x50] sm:$0xff]  ;;  %v185_v25 = vld [vmem:[%s2425_s5 + $0x58] sm:$0xff] }
  0x12   : > { %v1797_v23 = vpack.c.bf16 %v183_v22, %v182_v21  ;;  %v1800_v26 = vpack.c.bf16 %v185_v25, %v184_v24  ;;  %v1993_v27 = vld [vmem:[%s3489_s1 + $0x78] sm:$0xff]  ;;  %v1992_v28 = vld [vmem:[%s3489_s1 + $0x70] sm:$0xff]  ;;  %v1991_v29 = vld [vmem:[%s3489_s1 + $0x68] sm:$0xff] }
  0x13   : > { %864 = vmatpush.bf16.msra.mxu1 %v1993_v27  ;;  %v186_v30 = vld [vmem:[%s2425_s5 + $0x60] sm:$0xff]  ;;  %v187_v31 = vld [vmem:[%s2425_s5 + $0x68] sm:$0xff]  ;;  %v1989_v34 = vld [vmem:[%s3489_s1 + $0x58] sm:$0xff] }
  0x14   : > { %405 = vmatpush.bf16.msra.mxu0 %v1983_v2  ;;  %2004 = vmatpush.bf16.msra.mxu3 %v1983_v2  ;;  %v1803_v32 = vpack.c.bf16 %v187_v31, %v186_v30  ;;  %v1990_v33 = vld [vmem:[%s3489_s1 + $0x60] sm:$0xff]  ;;  %v1988_v35 = vld [vmem:[%s3489_s1 + $0x50] sm:$0xff]  ;;  %v1987_v36 = vld [vmem:[%s3489_s1 + $0x48] sm:$0xff] }
  0x15   : > { %v188_v37 = vld [vmem:[%s2425_s5 + $0x70] sm:$0xff]  ;;  %v189_v38 = vld [vmem:[%s2425_s5 + $0x78] sm:$0xff]  ;;  %v1986_v40 = vld [vmem:[%s3489_s1 + $0x40] sm:$0xff] }
  0x16   : > { %v1806_v39 = vpack.c.bf16 %v189_v38, %v188_v37  ;;  %v190_v41 = vld [vmem:[%s2425_s5 + $0x80] sm:$0xff]  ;;  %v191_v42 = vld [vmem:[%s2425_s5 + $0x88] sm:$0xff]  ;;  %v192_v51 = vld [vmem:[%s2425_s5 + $0x90] sm:$0xff] }
  0x17   : > { %865 = vmatpush.bf16.msra.mxu1 %v1992_v28  ;;  %v1809_v43 = vpack.c.bf16 %v191_v42, %v190_v41  ;;  %v2497_v45 = vld [vmem:[%s3490_s2] ss:$0 sm:$0xff]  ;;  %v193_v52 = vld [vmem:[%s2425_s5 + $0x98] sm:$0xff]  ;;  %v195_v2 = vld [vmem:[%s2425_s5 + $0xa8] sm:$0xff] }
  0x18   : > { %406 = vmatpush.bf16.msra.mxu0 %v1982_v3  ;;  %2005 = vmatpush.bf16.msra.mxu3 %v1982_v3  ;;  %v1812_v54 = vpack.c.bf16 %v193_v52, %v192_v51  ;;  %v194_v1 = vld [vmem:[%s2425_s5 + $0xa0] sm:$0xff]  ;;  %v196_v16 = vld [vmem:[%s2425_s5 + $0xb0] sm:$0xff] }
  0x19   : > { %v200_v52 = vld [vmem:[%s2425_s5 + $0xd0] sm:$0xff] }
  0x1b   : > { %866 = vmatpush.bf16.msra.mxu1 %v1991_v29 }
  0x1c   : > { %407 = vmatpush.bf16.msra.mxu0 %v1981_v4  ;;  %2006 = vmatpush.bf16.msra.mxu3 %v1981_v4  ;;  %v1815_v4 = vpack.c.bf16 %v195_v2, %v194_v1 }
  0x1f   : > { %867 = vmatpush.bf16.msra.mxu1 %v1990_v33 }
  0x20   : > { %408 = vmatpush.bf16.msra.mxu0 %v1980_v5  ;;  %2007 = vmatpush.bf16.msra.mxu3 %v1980_v5 }
  0x23   : > { %868 = vmatpush.bf16.msra.mxu1 %v1989_v34 }
  0x24   : > { %409 = vmatpush.bf16.msra.mxu0 %v1979_v6  ;;  %2008 = vmatpush.bf16.msra.mxu3 %v1979_v6 }
  0x27   : > { %869 = vmatpush.bf16.msra.mxu1 %v1988_v35 }
  0x28   : > { %410 = vmatpush.bf16.msra.mxu0 %v1978_v7  ;;  %2009 = vmatpush.bf16.msra.mxu3 %v1978_v7 }
  0x2b   : > { %1786 = vmatmul.msk.bf16.vlgmr.msra.gmra.mxu0 %vm2434_vm1, %v1785_v10  ;;  %870 = vmatpush.bf16.msra.mxu1 %v1987_v36 }
  0x2c   : > { %2010 = vmatpush.bf16.msrb.mxu3 %v1993_v27  ;;  %v223_v27 = vld [vmem:[%s2425_s5 + $0x188] sm:$0xff] }
  0x2f   : > { %871 = vmatpush.bf16.msra.mxu1 %v1986_v40 }
  0x30   : > { %2011 = vmatpush.bf16.msrb.mxu3 %v1992_v28 }
  0x34   : > { %2012 = vmatpush.bf16.msrb.mxu3 %v1991_v29 }
  0x38   : > { %2013 = vmatpush.bf16.msrb.mxu3 %v1990_v33  ;;  %v198_v33 = vld [vmem:[%s2425_s5 + $0xc0] sm:$0xff] }
  0x3b   : > { %1789 = vmatmul.msk.bf16.gmra.mxu0 %vm2434_vm1, %v1788_v14 }
  0x3c   : > { %2014 = vmatpush.bf16.msrb.mxu3 %v1989_v34  ;;  %v199_v34 = vld [vmem:[%s2425_s5 + $0xc8] sm:$0xff] }
  0x40   : > { %2015 = vmatpush.bf16.msrb.mxu3 %v1988_v35 }
  0x44   : > { %2016 = vmatpush.bf16.msrb.mxu3 %v1987_v36  ;;  %v1821_v36 = vpack.c.bf16 %v199_v34, %v198_v33 }
  0x48   : > { %2017 = vmatpush.bf16.msrb.mxu3 %v1986_v40 }
  0x4b   : > { %1792 = vmatmul.msk.bf16.gmra.mxu0 %vm2434_vm1, %v1791_v17  ;;  %v197_v17 = vld [vmem:[%s2425_s5 + $0xb8] sm:$0xff] }
  0x4c   : > { %v1818_v19 = vpack.c.bf16 %v197_v17, %v196_v16  ;;  %v228_v16 = vld [vmem:[%s2425_s5 + $0x1b0] sm:$0xff]  ;;  %v229_v17 = vld [vmem:[%s2425_s5 + $0x1b8] sm:$0xff] }
  0x5b   : > { %1795 = vmatmul.msk.bf16.gmra.mxu0 %vm2434_vm1, %v1794_v20 }
  0x6b   : > { %1798 = vmatmul.msk.bf16.gmra.mxu0 %vm2434_vm1, %v1797_v23 }
  0x7b   : > { %1801 = vmatmul.msk.bf16.gmra.mxu0 %vm2434_vm1, %v1800_v26  ;;  %v222_v26 = vld [vmem:[%s2425_s5 + $0x180] sm:$0xff] }
  0x7c   : > { %v1857_v29 = vpack.c.bf16 %v223_v27, %v222_v26  ;;  %v205_v26 = vld [vmem:[%s2425_s5 + $0xf8] sm:$0xff]  ;;  %v1999_v27 = vld [vmem:[%s3489_s1 + $0xa8] sm:$0xff] }
  0x7e   : > { %1858 = vmatmul.msk.bf16.vlgmr.msra.gmra.mxu3 %vm2434_vm1, %v1857_v29 }
  0x8b   : > { %1804 = vmatmul.msk.bf16.gmra.mxu0 %vm2434_vm1, %v1803_v32 }
  0x9b   : > { %1807 = vmatmul.msk.bf16.gmra.mxu0 %vm2434_vm1, %v1806_v39 }
  0xa8   : > { %v412_v44 = vpop.f32.mrf.mxu0 }
  0xa9   : > { %v413_v46 = vadd.f32 %v2497_v45, %v412_v44  ;;  %v225_v44 = vld [vmem:[%s2425_s5 + $0x198] sm:$0xff] }
  0xab   : > { %1810 = vmatmul.msk.bf16.gmra.mxu0 %vm2434_vm1, %v1809_v43  ;;  %2037 = vtanh.f32 %v413_v46  ;;  %v637_v55 = vmax.f32 %v413_v46, 0.0  ;;  %v224_v43 = vld [vmem:[%s2425_s5 + $0x190] sm:$0xff] }
  0xac   : > { %v1860_v47 = vpack.c.bf16 %v225_v44, %v224_v43 }
  0xae   : > { %1861 = vmatmul.msk.bf16.gmra.mxu3 %vm2434_vm1, %v1860_v47  ;;  %v206_v47 = vld [vmem:[%s2425_s5 + $0x100] sm:$0xff] }
  0xb0   : > { %v414_v48 = vpop.f32.mrf.mxu0 }
  0xb1   : > { %v415_v49 = vadd.f32 %v2497_v45, %v414_v48  ;;  %v2038_v53 = vpop.eup %2037 }
  0xb2   : > { %v701_v59 = vsel %vm572_vm2, %v2038_v53, %v637_v55  ;;  %v201_v53 = vld [vmem:[%s2425_s5 + $0xd8] sm:$0xff] }
  0xb3   : > { %2039 = vtanh.f32 %v415_v49  ;;  %v638_v56 = vmax.f32 %v415_v49, 0.0  ;;  %v1824_v55 = vpack.c.bf16 %v201_v53, %v200_v52 }
  0xb8   : > { %v417_v57 = vpop.f32.mrf.mxu0 }
  0xb9   : > { %v2040_v58 = vpop.eup %2039  ;;  %v418_v62 = vadd.f32 %v2497_v45, %v417_v57 }
  0xba   : > { %v702_v60 = vsel %vm572_vm2, %v2040_v58, %v638_v56 }
  0xbb   : > { %1813 = vmatmul.msk.bf16.gmra.mxu0 %vm2434_vm1, %v1812_v54  ;;  %v765_v61 = vpack.c.bf16 %v702_v60, %v701_v59  ;;  %2041 = vtanh.f32 %v418_v62  ;;  %v639_v5 = vmax.f32 %v418_v62, 0.0  ;;  %v226_v62 = vld [vmem:[%s2425_s5 + $0x1a0] sm:$0xff] }
  0xbd   : > { %872 = vmatmul.bf16.vlgmr.msra.gmra.mxu1 %v765_v61 }
  0xc0   : > { %v419_v63 = vpop.f32.mrf.mxu0 }
  0xc1   : > { %v420_v0 = vadd.f32 %v2497_v45, %v419_v63  ;;  %v2042_v3 = vpop.eup %2041  ;;  %v227_v63 = vld [vmem:[%s2425_s5 + $0x1a8] sm:$0xff] }
  0xc2   : > { %v703_v9 = vsel %vm572_vm2, %v2042_v3, %v639_v5  ;;  %v1863_v1 = vpack.c.bf16 %v227_v63, %v226_v62  ;;  %v202_v5 = vld [vmem:[%s2425_s5 + $0xe0] sm:$0xff] }
  0xc3   : > { %2043 = vtanh.f32 %v420_v0  ;;  %v640_v6 = vmax.f32 %v420_v0, 0.0 }
  0xc4   : > { %1864 = vmatmul.msk.bf16.gmra.mxu3 %vm2434_vm1, %v1863_v1 }
  0xc8   : > { %v422_v7 = vpop.f32.mrf.mxu0 }
  0xc9   : > { %v2044_v8 = vpop.eup %2043  ;;  %v423_v13 = vadd.f32 %v2497_v45, %v422_v7 }
  0xca   : > { %v704_v10 = vsel %vm572_vm2, %v2044_v8, %v640_v6  ;;  %v203_v6 = vld [vmem:[%s2425_s5 + $0xe8] sm:$0xff] }
  0xcb   : > { %1816 = vmatmul.msk.bf16.gmra.mxu0 %vm2434_vm1, %v1815_v4  ;;  %v766_v12 = vpack.c.bf16 %v704_v10, %v703_v9  ;;  %2045 = vtanh.f32 %v423_v13  ;;  %v641_v20 = vmax.f32 %v423_v13, 0.0  ;;  %v1827_v8 = vpack.c.bf16 %v203_v6, %v202_v5 }
  0xcd   : > { %877 = vmatmul.bf16.gmra.mxu1 %v766_v12 }
  0xd0   : > { %v424_v14 = vpop.f32.mrf.mxu0 }
  0xd1   : > { %v425_v15 = vadd.f32 %v2497_v45, %v424_v14  ;;  %v2046_v18 = vpop.eup %2045 }
  0xd2   : > { %v705_v24 = vsel %vm572_vm2, %v2046_v18, %v641_v20 }
  0xd3   : > { %2047 = vtanh.f32 %v425_v15  ;;  %v642_v21 = vmax.f32 %v425_v15, 0.0 }
  0xd8   : > { %v427_v22 = vpop.f32.mrf.mxu0 }
  0xd9   : > { %v2048_v23 = vpop.eup %2047  ;;  %v428_v30 = vadd.f32 %v2497_v45, %v427_v22 }
  0xda   : > { %v706_v25 = vsel %vm572_vm2, %v2048_v23, %v642_v21  ;;  %v2001_v21 = vld [vmem:[%s3489_s1 + $0xb8] sm:$0xff] }
  0xdb   : > { %1819 = vmatmul.msk.bf16.gmra.mxu0 %vm2434_vm1, %v1818_v19  ;;  %v767_v28 = vpack.c.bf16 %v706_v25, %v705_v24  ;;  %2049 = vtanh.f32 %v428_v30  ;;  %v643_v37 = vmax.f32 %v428_v30, 0.0  ;;  %v1866_v19 = vpack.c.bf16 %v229_v17, %v228_v16  ;;  %1324 = vmatpush.bf16.msra.mxu2 %v2001_v21  ;;  %v2000_v24 = vld [vmem:[%s3489_s1 + $0xb0] sm:$0xff]  ;;  %v234_v16 = vld [vmem:[%s2425_s5 + $0x1e0] sm:$0xff]  ;;  %v235_v17 = vld [vmem:[%s2425_s5 + $0x1e8] sm:$0xff] }
  0xdc   : > { %2018 = vmatpush.bf16.msra.mxu3 %v2001_v21  ;;  %v204_v25 = vld [vmem:[%s2425_s5 + $0xf0] sm:$0xff] }
  0xdd   : > { %882 = vmatmul.bf16.gmra.mxu1 %v767_v28  ;;  %1867 = vmatmul.msk.bf16.gmra.mxu3 %vm2434_vm1, %v1866_v19  ;;  %v1830_v29 = vpack.c.bf16 %v205_v26, %v204_v25  ;;  %v1875_v19 = vpack.c.bf16 %v235_v17, %v234_v16  ;;  %v210_v26 = vld [vmem:[%s2425_s5 + $0x120] sm:$0xff] }
  0xdf   : > { %1325 = vmatpush.bf16.msra.mxu2 %v2000_v24 }
  0xe0   : > { %v429_v31 = vpop.f32.mrf.mxu0  ;;  %2019 = vmatpush.bf16.msra.mxu3 %v2000_v24 }
  0xe1   : > { %v430_v32 = vadd.f32 %v2497_v45, %v429_v31  ;;  %v2050_v35 = vpop.eup %2049 }
  0xe2   : > { %v707_v41 = vsel %vm572_vm2, %v2050_v35, %v643_v37  ;;  %v230_v37 = vld [vmem:[%s2425_s5 + $0x1c0] sm:$0xff] }
  0xe3   : > { %2051 = vtanh.f32 %v430_v32  ;;  %v644_v38 = vmax.f32 %v430_v32, 0.0  ;;  %1326 = vmatpush.bf16.msra.mxu2 %v1999_v27 }
  0xe4   : > { %2020 = vmatpush.bf16.msra.mxu3 %v1999_v27  ;;  %v211_v27 = vld [vmem:[%s2425_s5 + $0x128] sm:$0xff] }
  0xe8   : > { %v432_v39 = vpop.f32.mrf.mxu0 }
  0xe9   : > { %v2052_v40 = vpop.eup %2051  ;;  %v433_v48 = vadd.f32 %v2497_v45, %v432_v39 }
  0xea   : > { %v708_v42 = vsel %vm572_vm2, %v2052_v40, %v644_v38  ;;  %v231_v38 = vld [vmem:[%s2425_s5 + $0x1c8] sm:$0xff] }
  0xeb   : > { %1822 = vmatmul.msk.bf16.gmra.mxu0 %vm2434_vm1, %v1821_v36  ;;  %v768_v46 = vpack.c.bf16 %v708_v42, %v707_v41  ;;  %2053 = vtanh.f32 %v433_v48  ;;  %v645_v56 = vmax.f32 %v433_v48, 0.0  ;;  %v1998_v36 = vld [vmem:[%s3489_s1 + $0xa0] sm:$0xff]  ;;  %v1869_v40 = vpack.c.bf16 %v231_v38, %v230_v37  ;;  %v1997_v42 = vld [vmem:[%s3489_s1 + $0x98] sm:$0xff]  ;;  %v207_v48 = vld [vmem:[%s2425_s5 + $0x108] sm:$0xff] }
  0xec   : > { %1327 = vmatpush.bf16.msra.mxu2 %v1998_v36  ;;  %2021 = vmatpush.bf16.msra.mxu3 %v1998_v36  ;;  %v1833_v52 = vpack.c.bf16 %v207_v48, %v206_v47 }
  0xed   : > { %887 = vmatmul.bf16.gmra.mxu1 %v768_v46  ;;  %1870 = vmatmul.msk.bf16.gmra.mxu3 %vm2434_vm1, %v1869_v40  ;;  %v1996_v46 = vld [vmem:[%s3489_s1 + $0x90] sm:$0xff] }
  0xee   : > { %v236_v40 = vld [vmem:[%s2425_s5 + $0x1f0] sm:$0xff] }
  0xf0   : > { %v434_v49 = vpop.f32.mrf.mxu0  ;;  %1328 = vmatpush.bf16.msra.mxu2 %v1997_v42  ;;  %2022 = vmatpush.bf16.msra.mxu3 %v1997_v42 }
  0xf1   : > { %v435_v51 = vadd.f32 %v2497_v45, %v434_v49  ;;  %v2054_v54 = vpop.eup %2053  ;;  %v1995_v49 = vld [vmem:[%s3489_s1 + $0x88] sm:$0xff] }
  0xf2   : > { %v709_v60 = vsel %vm572_vm2, %v2054_v54, %v645_v56 }
  0xf3   : > { %2055 = vtanh.f32 %v435_v51  ;;  %v646_v57 = vmax.f32 %v435_v51, 0.0 }
  0xf4   : > { %1329 = vmatpush.bf16.msra.mxu2 %v1996_v46  ;;  %2023 = vmatpush.bf16.msra.mxu3 %v1996_v46 }
  0xf8   : > { %v437_v58 = vpop.f32.mrf.mxu0  ;;  %1330 = vmatpush.bf16.msra.mxu2 %v1995_v49  ;;  %2024 = vmatpush.bf16.msra.mxu3 %v1995_v49 }
  0xf9   : > { %v2056_v59 = vpop.eup %2055  ;;  %v438_v2 = vadd.f32 %v2497_v45, %v437_v58 }
  0xfa   : > { %v710_v61 = vsel %vm572_vm2, %v2056_v59, %v646_v57  ;;  %v1994_v59 = vld [vmem:[%s3489_s1 + $0x80] sm:$0xff] }
  0xfb   : > { %1825 = vmatmul.msk.bf16.gmra.mxu0 %vm2434_vm1, %v1824_v55  ;;  %v769_v0 = vpack.c.bf16 %v710_v61, %v709_v60  ;;  %2057 = vtanh.f32 %v438_v2  ;;  %v647_v9 = vmax.f32 %v438_v2, 0.0  ;;  %v232_v60 = vld [vmem:[%s2425_s5 + $0x1d0] sm:$0xff]  ;;  %v233_v61 = vld [vmem:[%s2425_s5 + $0x1d8] sm:$0xff] }
  0xfc   : > { %v1872_v63 = vpack.c.bf16 %v233_v61, %v232_v60  ;;  %1331 = vmatpush.bf16.msra.mxu2 %v1994_v59  ;;  %2025 = vmatpush.bf16.msra.mxu3 %v1994_v59 }
  0xfd   : > { %892 = vmatmul.bf16.gmra.mxu1 %v769_v0 }
  0xfe   : > { %1873 = vmatmul.msk.bf16.gmra.mxu3 %vm2434_vm1, %v1872_v63 }
 0x100   : > { %v439_v3 = vpop.f32.mrf.mxu0 }
 0x101   : > { %v440_v4 = vadd.f32 %v2497_v45, %v439_v3  ;;  %v2058_v7 = vpop.eup %2057  ;;  %v208_v3 = vld [vmem:[%s2425_s5 + $0x110] sm:$0xff]  ;;  %v532_v16 = vpop.f32.mrf.mxu3 }
 0x102   : > { %v711_v14 = vsel %vm572_vm2, %v2058_v7, %v647_v9 }
 0x103   : > { %2059 = vtanh.f32 %v440_v4  ;;  %v648_v10 = vmax.f32 %v440_v4, 0.0  ;;  %v209_v4 = vld [vmem:[%s2425_s5 + $0x118] sm:$0xff] }
 0x104   : > { %v1836_v6 = vpack.c.bf16 %v209_v4, %v208_v3 }
 0x108   : > { %v442_v12 = vpop.f32.mrf.mxu0 }
 0x109   : > { %v2060_v13 = vpop.eup %2059  ;;  %v443_v20 = vadd.f32 %v2497_v45, %v442_v12  ;;  %v2639_v12 = vld [vmem:[%s3490_s2 + $0x1] ss:$0 sm:$0xff] }
 0x10a   : > { %v712_v15 = vsel %vm572_vm2, %v2060_v13, %v648_v10 }
 0x10b   : > { %1828 = vmatmul.msk.bf16.gmra.mxu0 %vm2434_vm1, %v1827_v8  ;;  %v770_v18 = vpack.c.bf16 %v712_v15, %v711_v14  ;;  %2061 = vtanh.f32 %v443_v20  ;;  %v649_v30 = vmax.f32 %v443_v20, 0.0 }
 0x10d   : > { %897 = vmatmul.bf16.gmra.mxu1 %v770_v18 }
 0x10e   : > { %1876 = vmatmul.msk.bf16.gmra.mxu3 %vm2434_vm1, %v1875_v19 }
 0x110   : > { %v444_v22 = vpop.f32.mrf.mxu0 }
 0x111   : > { %v445_v23 = vadd.f32 %v2497_v45, %v444_v22  ;;  %v2062_v28 = vpop.eup %2061 }
 0x112   : > { %v713_v34 = vsel %vm572_vm2, %v2062_v28, %v649_v30 }
 0x113   : > { %2063 = vtanh.f32 %v445_v23  ;;  %v650_v31 = vmax.f32 %v445_v23, 0.0 }
 0x118   : > { %v447_v32 = vpop.f32.mrf.mxu0 }
 0x119   : > { %v2064_v33 = vpop.eup %2063  ;;  %v448_v41 = vadd.f32 %v2497_v45, %v447_v32 }
 0x11a   : > { %v714_v35 = vsel %vm572_vm2, %v2064_v33, %v650_v31 }
 0x11b   : > { %1831 = vmatmul.msk.bf16.gmra.mxu0 %vm2434_vm1, %v1830_v29  ;;  %v771_v39 = vpack.c.bf16 %v714_v35, %v713_v34  ;;  %2065 = vtanh.f32 %v448_v41  ;;  %v651_v53 = vmax.f32 %v448_v41, 0.0  ;;  %v1839_v29 = vpack.c.bf16 %v211_v27, %v210_v26  ;;  %v237_v41 = vld [vmem:[%s2425_s5 + $0x1f8] sm:$0xff] }
 0x11c   : > { %v1878_v47 = vpack.c.bf16 %v237_v41, %v236_v40 }
 0x11d   : > { %902 = vmatmul.bf16.gmra.mxu1 %v771_v39 }
 0x11e   : > { %1879 = vmatmul.msk.bf16.gmra.mxu3 %vm2434_vm1, %v1878_v47 }
 0x120   : > { %v449_v43 = vpop.f32.mrf.mxu0 }
 0x121   : > { %v450_v44 = vadd.f32 %v2497_v45, %v449_v43  ;;  %v2066_v51 = vpop.eup %2065 }
 0x122   : > { %v715_v57 = vsel %vm572_vm2, %v2066_v51, %v651_v53 }
 0x123   : > { %2067 = vtanh.f32 %v450_v44  ;;  %v652_v54 = vmax.f32 %v450_v44, 0.0 }
 0x128   : > { %v452_v55 = vpop.f32.mrf.mxu0 }
 0x129   : > { %v2068_v56 = vpop.eup %2067  ;;  %v453_v0 = vadd.f32 %v2497_v45, %v452_v55 }
 0x12a   : > { %v716_v58 = vsel %vm572_vm2, %v2068_v56, %v652_v54  ;;  %v212_v56 = vld [vmem:[%s2425_s5 + $0x130] sm:$0xff] }
 0x12b   : > { %1834 = vmatmul.msk.bf16.gmra.mxu0 %vm2434_vm1, %v1833_v52  ;;  %v772_v62 = vpack.c.bf16 %v716_v58, %v715_v57  ;;  %2069 = vtanh.f32 %v453_v0  ;;  %v653_v7 = vmax.f32 %v453_v0, 0.0  ;;  %v213_v57 = vld [vmem:[%s2425_s5 + $0x138] sm:$0xff] }
 0x12c   : > { %v1842_v59 = vpack.c.bf16 %v213_v57, %v212_v56  ;;  %v216_v56 = vld [vmem:[%s2425_s5 + $0x150] sm:$0xff]  ;;  %v217_v57 = vld [vmem:[%s2425_s5 + $0x158] sm:$0xff] }
 0x12d   : > { %907 = vmatmul.bf16.gmra.mxu1 %v772_v62 }
 0x130   : > { %v454_v1 = vpop.f32.mrf.mxu0 }
 0x131   : > { %v455_v2 = vadd.f32 %v2497_v45, %v454_v1  ;;  %v2070_v5 = vpop.eup %2069 }
 0x132   : > { %v717_v14 = vsel %vm572_vm2, %v2070_v5, %v653_v7 }
 0x133   : > { %2071 = vtanh.f32 %v455_v2  ;;  %v654_v8 = vmax.f32 %v455_v2, 0.0 }
 0x138   : > { %v457_v9 = vpop.f32.mrf.mxu0 }
 0x139   : > { %v2072_v10 = vpop.eup %2071  ;;  %v458_v20 = vadd.f32 %v2497_v45, %v457_v9 }
 0x13a   : > { %v873_v13 = vpop.f32.mrf.mxu1  ;;  %v718_v15 = vsel %vm572_vm2, %v2072_v10, %v654_v8 }
 0x13b   : > { %1837 = vmatmul.msk.bf16.gmra.mxu0 %vm2434_vm1, %v1836_v6  ;;  %v773_v18 = vpack.c.bf16 %v718_v15, %v717_v14  ;;  %v874_v21 = vadd.f32 %v2639_v12, %v873_v13  ;;  %2073 = vtanh.f32 %v458_v20  ;;  %v655_v31 = vmax.f32 %v458_v20, 0.0  ;;  %v214_v20 = vld [vmem:[%s2425_s5 + $0x140] sm:$0xff] }
 0x13d   : > { %912 = vmatmul.bf16.gmra.mxu1 %v773_v18  ;;  %2075 = vtanh.f32 %v874_v21  ;;  %v1097_v35 = vmax.f32 %v874_v21, 0.0  ;;  %v215_v21 = vld [vmem:[%s2425_s5 + $0x148] sm:$0xff] }
 0x140   : > { %v459_v22 = vpop.f32.mrf.mxu0 }
 0x141   : > { %v460_v23 = vadd.f32 %v2497_v45, %v459_v22  ;;  %v2074_v28 = vpop.eup %2073  ;;  %v533_v22 = vadd.f32 %v2497_v45, %v532_v16 }
 0x142   : > { %v875_v24 = vpop.f32.mrf.mxu1  ;;  %v719_v38 = vsel %vm572_vm2, %v2074_v28, %v655_v31 }
 0x143   : > { %2077 = vtanh.f32 %v460_v23  ;;  %v876_v25 = vadd.f32 %v2639_v12, %v875_v24  ;;  %v2076_v30 = vpop.eup %2075  ;;  %v656_v32 = vmax.f32 %v460_v23, 0.0  ;;  %v1845_v24 = vpack.c.bf16 %v215_v21, %v214_v20 }
 0x144   : > { %v1161_v44 = vsel %vm572_vm2, %v2076_v30, %v1097_v35 }
 0x145   : > { %2079 = vtanh.f32 %v876_v25  ;;  %v1098_v36 = vmax.f32 %v876_v25, 0.0 }
 0x148   : > { %v462_v33 = vpop.f32.mrf.mxu0 }
 0x149   : > { %v2078_v34 = vpop.eup %2077  ;;  %v463_v48 = vadd.f32 %v2497_v45, %v462_v33 }
 0x14a   : > { %v878_v37 = vpop.f32.mrf.mxu1  ;;  %v720_v39 = vsel %vm572_vm2, %v2078_v34, %v656_v32 }
 0x14b   : > { %v2080_v42 = vpop.eup %2079  ;;  %1840 = vmatmul.msk.bf16.gmra.mxu0 %vm2434_vm1, %v1839_v29  ;;  %v774_v43 = vpack.c.bf16 %v720_v39, %v719_v38  ;;  %v879_v51 = vadd.f32 %v2639_v12, %v878_v37  ;;  %2081 = vtanh.f32 %v463_v48  ;;  %v657_v61 = vmax.f32 %v463_v48, 0.0  ;;  %v534_v29 = vpop.f32.mrf.mxu3 }
 0x14c   : > { %v1162_v46 = vsel %vm572_vm2, %v2080_v42, %v1098_v36  ;;  %v535_v31 = vadd.f32 %v2497_v45, %v534_v29 }
 0x14d   : > { %917 = vmatmul.bf16.gmra.mxu1 %v774_v43  ;;  %v1225_v49 = vpack.c.bf16 %v1162_v46, %v1161_v44  ;;  %2083 = vtanh.f32 %v879_v51  ;;  %v1099_v1 = vmax.f32 %v879_v51, 0.0  ;;  %v685_v44 = vmax.f32 %v533_v22, 0.0 }
 0x14e   : > { %v686_v48 = vmax.f32 %v535_v31, 0.0 }
 0x14f   : > { %1332 = vmatmul.bf16.vlgmr.msra.gmra.mxu2 %v1225_v49 }
 0x150   : > { %v464_v52 = vpop.f32.mrf.mxu0 }
 0x151   : > { %v465_v53 = vadd.f32 %v2497_v45, %v464_v52  ;;  %v2082_v58 = vpop.eup %2081 }
 0x152   : > { %v880_v54 = vpop.f32.mrf.mxu1  ;;  %v721_v4 = vsel %vm572_vm2, %v2082_v58, %v657_v61 }
 0x153   : > { %2085 = vtanh.f32 %v465_v53  ;;  %v881_v55 = vadd.f32 %v2639_v12, %v880_v54  ;;  %v2084_v60 = vpop.eup %2083  ;;  %v658_v62 = vmax.f32 %v465_v53, 0.0  ;;  %v537_v49 = vpop.f32.mrf.mxu3 }
 0x154   : > { %v1163_v8 = vsel %vm572_vm2, %v2084_v60, %v1099_v1 }
 0x155   : > { %2087 = vtanh.f32 %v881_v55  ;;  %v1100_v2 = vmax.f32 %v881_v55, 0.0 }
 0x158   : > { %v467_v63 = vpop.f32.mrf.mxu0 }
 0x159   : > { %v2086_v0 = vpop.eup %2085  ;;  %v468_v10 = vadd.f32 %v2497_v45, %v467_v63 }
 0x15a   : > { %v883_v3 = vpop.f32.mrf.mxu1  ;;  %v722_v5 = vsel %vm572_vm2, %v2086_v0, %v658_v62  ;;  %v1848_v62 = vpack.c.bf16 %v217_v57, %v216_v56 }
 0x15b   : > { %v2088_v6 = vpop.eup %2087  ;;  %1843 = vmatmul.msk.bf16.gmra.mxu0 %vm2434_vm1, %v1842_v59  ;;  %v775_v7 = vpack.c.bf16 %v722_v5, %v721_v4  ;;  %v884_v14 = vadd.f32 %v2639_v12, %v883_v3  ;;  %2089 = vtanh.f32 %v468_v10  ;;  %v659_v26 = vmax.f32 %v468_v10, 0.0  ;;  %v539_v3 = vpop.f32.mrf.mxu3 }
 0x15c   : > { %v1164_v9 = vsel %vm572_vm2, %v2088_v6, %v1100_v2  ;;  %v538_v59 = vadd.f32 %v2497_v45, %v537_v49  ;;  %v540_v5 = vadd.f32 %v2497_v45, %v539_v3 }
 0x15d   : > { %922 = vmatmul.bf16.gmra.mxu1 %v775_v7  ;;  %v1226_v13 = vpack.c.bf16 %v1164_v9, %v1163_v8  ;;  %2091 = vtanh.f32 %v884_v14  ;;  %v1101_v32 = vmax.f32 %v884_v14, 0.0 }
 0x15e   : > { %v687_v20 = vmax.f32 %v538_v59, 0.0 }
 0x15f   : > { %1337 = vmatmul.bf16.gmra.mxu2 %v1226_v13 }
 0x160   : > { %v469_v15 = vpop.f32.mrf.mxu0 }
 0x161   : > { %v470_v17 = vadd.f32 %v2497_v45, %v469_v15  ;;  %v2090_v23 = vpop.eup %2089 }
 0x162   : > { %v885_v18 = vpop.f32.mrf.mxu1  ;;  %v723_v35 = vsel %vm572_vm2, %v2090_v23, %v659_v26  ;;  %v688_v23 = vmax.f32 %v540_v5, 0.0 }
 0x163   : > { %2093 = vtanh.f32 %v470_v17  ;;  %v886_v19 = vadd.f32 %v2639_v12, %v885_v18  ;;  %v2092_v25 = vpop.eup %2091  ;;  %v660_v27 = vmax.f32 %v470_v17, 0.0 }
 0x164   : > { %v1165_v39 = vsel %vm572_vm2, %v2092_v25, %v1101_v32 }
 0x165   : > { %2095 = vtanh.f32 %v886_v19  ;;  %v1102_v33 = vmax.f32 %v886_v19, 0.0 }
 0x166   : > { %2097 = vtanh.f32 %v533_v22 }
 0x167   : > { %2099 = vtanh.f32 %v535_v31  ;;  %v219_v31 = vld [vmem:[%s2425_s5 + $0x168] sm:$0xff] }
 0x168   : > { %v472_v28 = vpop.f32.mrf.mxu0 }
 0x169   : > { %v2094_v30 = vpop.eup %2093  ;;  %v473_v41 = vadd.f32 %v2497_v45, %v472_v28 }
 0x16a   : > { %v888_v34 = vpop.f32.mrf.mxu1  ;;  %v724_v36 = vsel %vm572_vm2, %v2094_v30, %v660_v27  ;;  %v218_v30 = vld [vmem:[%s2425_s5 + $0x160] sm:$0xff] }
 0x16b   : > { %v2096_v37 = vpop.eup %2095  ;;  %1846 = vmatmul.msk.bf16.gmra.mxu0 %vm2434_vm1, %v1845_v24  ;;  %v776_v38 = vpack.c.bf16 %v724_v36, %v723_v35  ;;  %v889_v43 = vadd.f32 %v2639_v12, %v888_v34  ;;  %2101 = vtanh.f32 %v473_v41  ;;  %v661_v0 = vmax.f32 %v473_v41, 0.0  ;;  %v542_v24 = vpop.f32.mrf.mxu3 }
 0x16c   : > { %v1166_v40 = vsel %vm572_vm2, %v2096_v37, %v1102_v33  ;;  %v2098_v46 = vpop.eup %2097  ;;  %v543_v33 = vadd.f32 %v2497_v45, %v542_v24  ;;  %v1851_v36 = vpack.c.bf16 %v219_v31, %v218_v30 }
 0x16d   : > { %927 = vmatmul.bf16.gmra.mxu1 %v776_v38  ;;  %v1227_v42 = vpack.c.bf16 %v1166_v40, %v1165_v39  ;;  %v2100_v52 = vpop.eup %2099  ;;  %2103 = vtanh.f32 %v889_v43  ;;  %v749_v54 = vsel %vm572_vm2, %v2098_v46, %v685_v44  ;;  %v1103_v6 = vmax.f32 %v889_v43, 0.0 }
 0x16e   : > { %v750_v58 = vsel %vm572_vm2, %v2100_v52, %v686_v48 }
 0x16f   : > { %1342 = vmatmul.bf16.gmra.mxu2 %v1227_v42  ;;  %v789_v60 = vpack.c.bf16 %v750_v58, %v749_v54  ;;  %v689_v58 = vmax.f32 %v543_v33, 0.0 }
 0x170   : > { %v474_v47 = vpop.f32.mrf.mxu0 }
 0x171   : > { %v475_v51 = vadd.f32 %v2497_v45, %v474_v47  ;;  %v2102_v61 = vpop.eup %2101  ;;  %992 = vmatmul.bf16.vlgmr.msrb.gmra.mxu3 %v789_v60 }
 0x172   : > { %v890_v53 = vpop.f32.mrf.mxu1  ;;  %v725_v9 = vsel %vm572_vm2, %v2102_v61, %v661_v0 }
 0x173   : > { %2105 = vtanh.f32 %v475_v51  ;;  %v891_v55 = vadd.f32 %v2639_v12, %v890_v53  ;;  %v2104_v63 = vpop.eup %2103  ;;  %v662_v1 = vmax.f32 %v475_v51, 0.0  ;;  %v544_v41 = vpop.f32.mrf.mxu3 }
 0x174   : > { %v1167_v15 = vsel %vm572_vm2, %v2104_v63, %v1103_v6  ;;  %v545_v43 = vadd.f32 %v2497_v45, %v544_v41 }
 0x175   : > { %2107 = vtanh.f32 %v891_v55  ;;  %v1104_v7 = vmax.f32 %v891_v55, 0.0 }
 0x176   : > { %2109 = vtanh.f32 %v538_v59  ;;  %v690_v61 = vmax.f32 %v545_v43, 0.0 }
 0x177   : > { %2111 = vtanh.f32 %v540_v5  ;;  %v221_v5 = vld [vmem:[%s2425_s5 + $0x178] sm:$0xff] }
 0x178   : > { %v477_v2 = vpop.f32.mrf.mxu0 }
 0x179   : > { %v2106_v4 = vpop.eup %2105  ;;  %v478_v17 = vadd.f32 %v2497_v45, %v477_v2 }
 0x17a   : > { %v893_v8 = vpop.f32.mrf.mxu1  ;;  %v726_v10 = vsel %vm572_vm2, %v2106_v4, %v662_v1  ;;  %v220_v4 = vld [vmem:[%s2425_s5 + $0x170] sm:$0xff] }
 0x17b   : > { %v2108_v13 = vpop.eup %2107  ;;  %1849 = vmatmul.msk.bf16.gmra.mxu0 %vm2434_vm1, %v1848_v62  ;;  %v777_v14 = vpack.c.bf16 %v726_v10, %v725_v9  ;;  %v894_v19 = vadd.f32 %v2639_v12, %v893_v8  ;;  %2113 = vtanh.f32 %v478_v17  ;;  %v663_v38 = vmax.f32 %v478_v17, 0.0  ;;  %v547_v62 = vpop.f32.mrf.mxu3 }
 0x17c   : > { %v1168_v16 = vsel %vm572_vm2, %v2108_v13, %v1104_v7  ;;  %v2110_v21 = vpop.eup %2109  ;;  %v548_v7 = vadd.f32 %v2497_v45, %v547_v62  ;;  %v1854_v10 = vpack.c.bf16 %v221_v5, %v220_v4 }
 0x17d   : > { %932 = vmatmul.bf16.gmra.mxu1 %v777_v14  ;;  %v1228_v18 = vpack.c.bf16 %v1168_v16, %v1167_v15  ;;  %v2112_v26 = vpop.eup %2111  ;;  %2115 = vtanh.f32 %v894_v19  ;;  %v751_v28 = vsel %vm572_vm2, %v2110_v21, %v687_v20  ;;  %v1105_v44 = vmax.f32 %v894_v19, 0.0 }
 0x17e   : > { %v752_v32 = vsel %vm572_vm2, %v2112_v26, %v688_v23 }
 0x17f   : > { %1347 = vmatmul.bf16.gmra.mxu2 %v1228_v18  ;;  %v790_v34 = vpack.c.bf16 %v752_v32, %v751_v28  ;;  %v691_v32 = vmax.f32 %v548_v7, 0.0 }
 0x180   : > { %v479_v22 = vpop.f32.mrf.mxu0 }
 0x181   : > { %v480_v25 = vadd.f32 %v2497_v45, %v479_v22  ;;  %v2114_v35 = vpop.eup %2113  ;;  %997 = vmatmul.bf16.gmra.mxu3 %v790_v34 }
 0x182   : > { %v895_v27 = vpop.f32.mrf.mxu1  ;;  %v727_v48 = vsel %vm572_vm2, %v2114_v35, %v663_v38 }
 0x183   : > { %2117 = vtanh.f32 %v480_v25  ;;  %v896_v29 = vadd.f32 %v2639_v12, %v895_v27  ;;  %v2116_v37 = vpop.eup %2115  ;;  %v664_v39 = vmax.f32 %v480_v25, 0.0  ;;  %v549_v17 = vpop.f32.mrf.mxu3 }
 0x184   : > { %v1169_v53 = vsel %vm572_vm2, %v2116_v37, %v1105_v44  ;;  %v550_v19 = vadd.f32 %v2497_v45, %v549_v17 }
 0x185   : > { %2119 = vtanh.f32 %v896_v29  ;;  %v1106_v46 = vmax.f32 %v896_v29, 0.0 }
 0x186   : > { %2121 = vtanh.f32 %v543_v33  ;;  %v692_v11 = vmax.f32 %v550_v19, 0.0 }
 0x187   : > { %2123 = vtanh.f32 %v545_v43 }
 0x188   : > { %v482_v40 = vpop.f32.mrf.mxu0 }
 0x189   : > { %v2118_v42 = vpop.eup %2117  ;;  %v483_v55 = vadd.f32 %v2497_v45, %v482_v40 }
 0x18a   : > { %v898_v47 = vpop.f32.mrf.mxu1  ;;  %v728_v49 = vsel %vm572_vm2, %v2118_v42, %v664_v39 }
 0x18b   : > { %v2120_v51 = vpop.eup %2119  ;;  %1852 = vmatmul.msk.bf16.gmra.mxu0 %vm2434_vm1, %v1851_v36  ;;  %v778_v52 = vpack.c.bf16 %v728_v49, %v727_v48  ;;  %v899_v57 = vadd.f32 %v2639_v12, %v898_v47  ;;  %2125 = vtanh.f32 %v483_v55  ;;  %v665_v14 = vmax.f32 %v483_v55, 0.0  ;;  %v552_v35 = vpop.f32.mrf.mxu3 }
 0x18c   : > { %v1170_v54 = vsel %vm572_vm2, %v2120_v51, %v1106_v46  ;;  %v2122_v59 = vpop.eup %2121  ;;  %v553_v43 = vadd.f32 %v2497_v45, %v552_v35 }
 0x18d   : > { %937 = vmatmul.bf16.gmra.mxu1 %v778_v52  ;;  %v1229_v56 = vpack.c.bf16 %v1170_v54, %v1169_v53  ;;  %v2124_v0 = vpop.eup %2123  ;;  %2127 = vtanh.f32 %v899_v57  ;;  %v753_v2 = vsel %vm572_vm2, %v2122_v59, %v689_v58  ;;  %v1107_v20 = vmax.f32 %v899_v57, 0.0 }
 0x18e   : > { %v754_v6 = vsel %vm572_vm2, %v2124_v0, %v690_v61 }
 0x18f   : > { %1352 = vmatmul.bf16.gmra.mxu2 %v1229_v56  ;;  %v791_v8 = vpack.c.bf16 %v754_v6, %v753_v2  ;;  %v693_v2 = vmax.f32 %v553_v43, 0.0 }
 0x190   : > { %v484_v60 = vpop.f32.mrf.mxu0 }
 0x191   : > { %v485_v63 = vadd.f32 %v2497_v45, %v484_v60  ;;  %v2126_v9 = vpop.eup %2125  ;;  %1002 = vmatmul.bf16.gmra.mxu3 %v791_v8 }
 0x192   : > { %v900_v1 = vpop.f32.mrf.mxu1  ;;  %v729_v23 = vsel %vm572_vm2, %v2126_v9, %v665_v14 }
 0x193   : > { %2129 = vtanh.f32 %v485_v63  ;;  %v901_v3 = vadd.f32 %v2639_v12, %v900_v1  ;;  %v2128_v13 = vpop.eup %2127  ;;  %v666_v15 = vmax.f32 %v485_v63, 0.0  ;;  %v554_v51 = vpop.f32.mrf.mxu3 }
 0x194   : > { %v1171_v27 = vsel %vm572_vm2, %v2128_v13, %v1107_v20  ;;  %v555_v54 = vadd.f32 %v2497_v45, %v554_v51 }
 0x195   : > { %2131 = vtanh.f32 %v901_v3  ;;  %v1108_v21 = vmax.f32 %v901_v3, 0.0 }
 0x196   : > { %2133 = vtanh.f32 %v548_v7  ;;  %v694_v5 = vmax.f32 %v555_v54, 0.0  ;;  %v2794_v7 = vld [vmem:[%s3490_s2] ss:$0 sm:$0xff] }
 0x197   : > { %2135 = vtanh.f32 %v550_v19 }
 0x198   : > { %v487_v16 = vpop.f32.mrf.mxu0 }
 0x199   : > { %v2130_v18 = vpop.eup %2129  ;;  %v488_v29 = vadd.f32 %v2497_v45, %v487_v16 }
 0x19a   : > { %v903_v22 = vpop.f32.mrf.mxu1  ;;  %v730_v24 = vsel %vm572_vm2, %v2130_v18, %v666_v15 }
 0x19b   : > { %v2132_v25 = vpop.eup %2131  ;;  %1855 = vmatmul.msk.bf16.gmra.mxu0 %vm2434_vm1, %v1854_v10  ;;  %v779_v26 = vpack.c.bf16 %v730_v24, %v729_v23  ;;  %v904_v31 = vadd.f32 %v2639_v12, %v903_v22  ;;  %2137 = vtanh.f32 %v488_v29  ;;  %v667_v47 = vmax.f32 %v488_v29, 0.0  ;;  %v557_v6 = vpop.f32.mrf.mxu3 }
 0x19c   : > { %v1172_v28 = vsel %vm572_vm2, %v2132_v25, %v1108_v21  ;;  %v2134_v33 = vpop.eup %2133  ;;  %v558_v17 = vadd.f32 %v2794_v7, %v557_v6 }
 0x19d   : > { %942 = vmatmul.bf16.gmra.mxu1 %v779_v26  ;;  %v1230_v30 = vpack.c.bf16 %v1172_v28, %v1171_v27  ;;  %v2136_v37 = vpop.eup %2135  ;;  %2139 = vtanh.f32 %v904_v31  ;;  %v755_v39 = vsel %vm572_vm2, %v2134_v33, %v691_v32  ;;  %v1109_v53 = vmax.f32 %v904_v31, 0.0 }
 0x19e   : > { %v756_v41 = vsel %vm572_vm2, %v2136_v37, %v692_v11  ;;  %v695_v37 = vmax.f32 %v558_v17, 0.0 }
 0x19f   : > { %1357 = vmatmul.bf16.gmra.mxu2 %v1230_v30  ;;  %v792_v42 = vpack.c.bf16 %v756_v41, %v755_v39 }
 0x1a0   : > { %v489_v34 = vpop.f32.mrf.mxu0 }
 0x1a1   : > { %v490_v36 = vadd.f32 %v2497_v45, %v489_v34  ;;  %v2138_v44 = vpop.eup %2137  ;;  %1007 = vmatmul.bf16.gmra.mxu3 %v792_v42 }
 0x1a2   : > { %v905_v38 = vpop.f32.mrf.mxu1  ;;  %v731_v57 = vsel %vm572_vm2, %v2138_v44, %v667_v47 }
 0x1a3   : > { %2141 = vtanh.f32 %v490_v36  ;;  %v906_v40 = vadd.f32 %v2639_v12, %v905_v38  ;;  %v2140_v46 = vpop.eup %2139  ;;  %v668_v48 = vmax.f32 %v490_v36, 0.0  ;;  %v559_v22 = vpop.f32.mrf.mxu3 }
 0x1a4   : > { %v1173_v61 = vsel %vm572_vm2, %v2140_v46, %v1109_v53  ;;  %v560_v24 = vadd.f32 %v2794_v7, %v559_v22 }
 0x1a5   : > { %2143 = vtanh.f32 %v906_v40  ;;  %v1110_v55 = vmax.f32 %v906_v40, 0.0 }
 0x1a6   : > { %2145 = vtanh.f32 %v553_v43  ;;  %v696_v38 = vmax.f32 %v560_v24, 0.0 }
 0x1a7   : > { %2147 = vtanh.f32 %v555_v54 }
 0x1a8   : > { %v492_v49 = vpop.f32.mrf.mxu0 }
 0x1a9   : > { %v2142_v52 = vpop.eup %2141  ;;  %v493_v63 = vadd.f32 %v2497_v45, %v492_v49 }
 0x1aa   : > { %v908_v56 = vpop.f32.mrf.mxu1  ;;  %v732_v58 = vsel %vm572_vm2, %v2142_v52, %v668_v48 }
 0x1ab   : > { %v2144_v59 = vpop.eup %2143  ;;  %v780_v60 = vpack.c.bf16 %v732_v58, %v731_v57  ;;  %v909_v1 = vadd.f32 %v2639_v12, %v908_v56  ;;  %2149 = vtanh.f32 %v493_v63  ;;  %v669_v19 = vmax.f32 %v493_v63, 0.0  ;;  %v562_v41 = vpop.f32.mrf.mxu3 }
 0x1ac   : > { %v1174_v62 = vsel %vm572_vm2, %v2144_v59, %v1110_v55  ;;  %v2146_v3 = vpop.eup %2145  ;;  %v563_v51 = vadd.f32 %v2794_v7, %v562_v41 }
 0x1ad   : > { %947 = vmatmul.bf16.gmra.mxu1 %v780_v60  ;;  %v1231_v0 = vpack.c.bf16 %v1174_v62, %v1173_v61  ;;  %v2148_v9 = vpop.eup %2147  ;;  %2151 = vtanh.f32 %v909_v1  ;;  %v757_v13 = vsel %vm572_vm2, %v2146_v3, %v693_v2  ;;  %v1111_v25 = vmax.f32 %v909_v1, 0.0 }
 0x1ae   : > { %v758_v14 = vsel %vm572_vm2, %v2148_v9, %v694_v5 }
 0x1af   : > { %1362 = vmatmul.bf16.gmra.mxu2 %v1231_v0  ;;  %v793_v15 = vpack.c.bf16 %v758_v14, %v757_v13  ;;  %v697_v13 = vmax.f32 %v563_v51, 0.0 }
 0x1b0   : > { %v494_v4 = vpop.f32.mrf.mxu0 }
 0x1b1   : > { %v495_v8 = vadd.f32 %v2794_v7, %v494_v4  ;;  %v2150_v16 = vpop.eup %2149  ;;  %1012 = vmatmul.bf16.gmra.mxu3 %v793_v15 }
 0x1b2   : > { %v910_v45 = vpop.f32.mrf.mxu1  ;;  %v733_v28 = vsel %vm572_vm2, %v2150_v16, %v669_v19 }
 0x1b3   : > { %2153 = vtanh.f32 %v495_v8  ;;  %v911_v10 = vadd.f32 %v2639_v12, %v910_v45  ;;  %v2152_v18 = vpop.eup %2151  ;;  %v670_v20 = vmax.f32 %v495_v8, 0.0  ;;  %v564_v58 = vpop.f32.mrf.mxu3  ;;  %v2294_v8 = vld [vmem:[%s2425_s5] sm:$0xff] }
 0x1b4   : > { %v1175_v32 = vsel %vm572_vm2, %v2152_v18, %v1111_v25  ;;  %v565_v63 = vadd.f32 %v2794_v7, %v564_v58  ;;  %v239_v9 = vsel %vm238_vm0, %v2294_v8, 0.0  ;;  %v2837_v45 = vld [vmem:[%s3490_s2 + $0x2] ss:$0 sm:$0xff] }
 0x1b5   : > { %2155 = vtanh.f32 %v911_v10  ;;  %v1112_v26 = vmax.f32 %v911_v10, 0.0  ;;  %v1494_v19 = vsel %vm1493_vm3, %v239_v9, 1.0 }
 0x1b6   : > { %2157 = vtanh.f32 %v558_v17 }
 0x1b7   : > { %2159 = vtanh.f32 %v560_v24 }
 0x1b8   : > { %v497_v21 = vpop.f32.mrf.mxu0 }
 0x1b9   : > { %v2154_v23 = vpop.eup %2153  ;;  %v498_v34 = vadd.f32 %v2794_v7, %v497_v21 }
 0x1ba   : > { %v913_v27 = vpop.f32.mrf.mxu1  ;;  %v734_v29 = vsel %vm572_vm2, %v2154_v23, %v670_v20  ;;  %v698_v20 = vmax.f32 %v565_v63, 0.0 }
 0x1bb   : > { %v2156_v30 = vpop.eup %2155  ;;  %v781_v31 = vpack.c.bf16 %v734_v29, %v733_v28  ;;  %v914_v35 = vadd.f32 %v2639_v12, %v913_v27  ;;  %2161 = vtanh.f32 %v498_v34  ;;  %v671_v53 = vmax.f32 %v498_v34, 0.0  ;;  %v567_v16 = vpop.f32.mrf.mxu3 }
 0x1bc   : > { %v1176_v33 = vsel %vm572_vm2, %v2156_v30, %v1112_v26  ;;  %v2158_v39 = vpop.eup %2157  ;;  %v2295_v26 = vld [vmem:[%s2425_s5 + $0x8] sm:$0xff]  ;;  %v568_v30 = vadd.f32 %v2794_v7, %v567_v16 }
 0x1bd   : > { %952 = vmatmul.bf16.gmra.mxu1 %v781_v31  ;;  %v1232_v11 = vpack.c.bf16 %v1176_v33, %v1175_v32  ;;  %v2160_v42 = vpop.eup %2159  ;;  %2163 = vtanh.f32 %v914_v35  ;;  %v759_v46 = vsel %vm572_vm2, %v2158_v39, %v695_v37  ;;  %v1113_v57 = vmax.f32 %v914_v35, 0.0 }
 0x1be   : > { %v760_v47 = vsel %vm572_vm2, %v2160_v42, %v696_v38  ;;  %v240_v27 = vsel %vm238_vm0, %v2295_v26, 0.0 }
 0x1bf   : > { %1367 = vmatmul.bf16.gmra.mxu2 %v1232_v11  ;;  %v794_v48 = vpack.c.bf16 %v760_v47, %v759_v46 }
 0x1c0   : > { %v499_v36 = vpop.f32.mrf.mxu0 }
 0x1c1   : > { %v500_v40 = vadd.f32 %v2794_v7, %v499_v36  ;;  %v2162_v49 = vpop.eup %2161  ;;  %1017 = vmatmul.bf16.gmra.mxu3 %v794_v48  ;;  %v1495_v36 = vsel %vm1493_vm3, %v240_v27, 1.0 }
 0x1c2   : > { %v915_v43 = vpop.f32.mrf.mxu1  ;;  %v735_v61 = vsel %vm572_vm2, %v2162_v49, %v671_v53 }
 0x1c3   : > { %2165 = vtanh.f32 %v500_v40  ;;  %v916_v44 = vadd.f32 %v2639_v12, %v915_v43  ;;  %v2164_v52 = vpop.eup %2163  ;;  %v672_v54 = vmax.f32 %v500_v40, 0.0  ;;  %v569_v37 = vpop.f32.mrf.mxu3 }
 0x1c4   : > { %v1177_v2 = vsel %vm572_vm2, %v2164_v52, %v1113_v57  ;;  %v570_v43 = vadd.f32 %v2794_v7, %v569_v37 }
 0x1c5   : > { %2167 = vtanh.f32 %v916_v44  ;;  %v1114_v59 = vmax.f32 %v916_v44, 0.0 }
 0x1c6   : > { %2169 = vtanh.f32 %v563_v51 }
 0x1c7   : > { %2171 = vtanh.f32 %v565_v63 }
 0x1c8   : > { %v502_v55 = vpop.f32.mrf.mxu0 }
 0x1c9   : > { %v2166_v56 = vpop.eup %2165  ;;  %v503_v4 = vadd.f32 %v2794_v7, %v502_v55 }
 0x1ca   : > { %v918_v60 = vpop.f32.mrf.mxu1  ;;  %v736_v62 = vsel %vm572_vm2, %v2166_v56, %v672_v54  ;;  %v2296_v56 = vld [vmem:[%s2425_s5 + $0x10] sm:$0xff] }
 0x1cb   : > { %v2168_v0 = vpop.eup %2167  ;;  %v782_v1 = vpack.c.bf16 %v736_v62, %v735_v61  ;;  %v919_v6 = vadd.f32 %v2639_v12, %v918_v60  ;;  %2173 = vtanh.f32 %v503_v4  ;;  %v673_v35 = vmax.f32 %v503_v4, 0.0 }
 0x1cc   : > { %v1178_v3 = vsel %vm572_vm2, %v2168_v0, %v1114_v59  ;;  %v2170_v14 = vpop.eup %2169  ;;  %v241_v57 = vsel %vm238_vm0, %v2296_v56, 0.0  ;;  %v699_v59 = vmax.f32 %v568_v30, 0.0  ;;  %v700_v60 = vmax.f32 %v570_v43, 0.0 }
 0x1cd   : > { %957 = vmatmul.bf16.gmra.mxu1 %v782_v1  ;;  %v1233_v5 = vpack.c.bf16 %v1178_v3, %v1177_v2  ;;  %2175 = vtanh.f32 %v919_v6  ;;  %v2172_v21 = vpop.eup %2171  ;;  %v761_v24 = vsel %vm572_vm2, %v2170_v14, %v697_v13  ;;  %v1115_v38 = vmax.f32 %v919_v6, 0.0  ;;  %v2297_v13 = vld [vmem:[%s2425_s5 + $0x18] sm:$0xff] }
 0x1ce   : > { %v762_v28 = vsel %vm572_vm2, %v2172_v21, %v698_v20  ;;  %v1496_v2 = vsel %vm1493_vm3, %v241_v57, 1.0  ;;  %v242_v14 = vsel %vm238_vm0, %v2297_v13, 0.0 }
 0x1cf   : > { %1372 = vmatmul.bf16.gmra.mxu2 %v1233_v5  ;;  %v795_v31 = vpack.c.bf16 %v762_v28, %v761_v24  ;;  %v1497_v24 = vsel %vm1493_vm3, %v242_v14, 1.0 }
 0x1d0   : > { %v504_v10 = vpop.f32.mrf.mxu0 }
 0x1d1   : > { %v505_v15 = vadd.f32 %v2794_v7, %v504_v10  ;;  %v2174_v29 = vpop.eup %2173  ;;  %1022 = vmatmul.bf16.gmra.mxu3 %v795_v31 }
 0x1d2   : > { %v920_v17 = vpop.f32.mrf.mxu1  ;;  %v1333_v18 = vpop.f32.mrf.mxu2  ;;  %v737_v47 = vsel %vm572_vm2, %v2174_v29, %v673_v35  ;;  %v2298_v35 = vld [vmem:[%s2425_s5 + $0x20] sm:$0xff] }
 0x1d3   : > { %2177 = vtanh.f32 %v505_v15  ;;  %v921_v22 = vadd.f32 %v2639_v12, %v920_v17  ;;  %v1334_v23 = vadd.f32 %v2837_v45, %v1333_v18  ;;  %v2176_v32 = vpop.eup %2175  ;;  %v674_v33 = vmax.f32 %v505_v15, 0.0 }
 0x1d4   : > { %v1179_v49 = vsel %vm572_vm2, %v2176_v32, %v1115_v38 }
 0x1d5   : > { %2179 = vtanh.f32 %v921_v22  ;;  %v1558_v25 = vmul.f32 %v1494_v19, %v1334_v23  ;;  %v1116_v39 = vmax.f32 %v921_v22, 0.0 }
 0x1d6   : > { %2181 = vtanh.f32 %v568_v30 }
 0x1d7   : > { %1623 = vst.msk [vmem:[%s2850_s30] sm:$0xff] %vm1622_vm4, %v1558_v25  ;;  %2183 = vtanh.f32 %v570_v43 }
 0x1d8   : > { %v507_v34 = vpop.f32.mrf.mxu0 }
 0x1d9   : > { %v2178_v11 = vpop.eup %2177  ;;  %v508_v52 = vadd.f32 %v2794_v7, %v507_v34 }
 0x1da   : > { %v923_v40 = vpop.f32.mrf.mxu1  ;;  %v1335_v41 = vpop.f32.mrf.mxu2  ;;  %v738_v42 = vsel %vm572_vm2, %v2178_v11, %v674_v33 }
 0x1db   : > { %v2180_v44 = vpop.eup %2179  ;;  %v1336_v46 = vadd.f32 %v2837_v45, %v1335_v41  ;;  %v783_v48 = vpack.c.bf16 %v738_v42, %v737_v47  ;;  %v924_v55 = vadd.f32 %v2639_v12, %v923_v40  ;;  %2185 = vtanh.f32 %v508_v52  ;;  %v2299_v47 = vld [vmem:[%s2425_s5 + $0x28] sm:$0xff] }
 0x1dc   : > { %v1180_v51 = vsel %vm572_vm2, %v2180_v44, %v1116_v39  ;;  %v2182_v61 = vpop.eup %2181  ;;  %v675_v19 = vmax.f32 %v508_v52, 0.0 }
 0x1dd   : > { %v1559_v53 = vmul.f32 %v1495_v36, %v1336_v46  ;;  %v1234_v54 = vpack.c.bf16 %v1180_v51, %v1179_v49  ;;  %962 = vmatmul.bf16.gmra.mxu1 %v783_v48  ;;  %v2184_v63 = vpop.eup %2183  ;;  %2187 = vtanh.f32 %v924_v55  ;;  %v763_v5 = vsel %vm572_vm2, %v2182_v61, %v699_v59 }
 0x1de   : > { %v764_v6 = vsel %vm572_vm2, %v2184_v63, %v700_v60  ;;  %v1117_v20 = vmax.f32 %v924_v55, 0.0  ;;  %v243_v36 = vsel %vm238_vm0, %v2298_v35, 0.0  ;;  %v244_v48 = vsel %vm238_vm0, %v2299_v47, 0.0 }
 0x1df   : > { %1624 = vst.msk [vmem:[%s2850_s30 + $0x8] sm:$0xff] %vm1622_vm4, %v1559_v53  ;;  %1377 = vmatmul.bf16.gmra.mxu2 %v1234_v54  ;;  %v796_v9 = vpack.c.bf16 %v764_v6, %v763_v5  ;;  %v1498_v41 = vsel %vm1493_vm3, %v243_v36, 1.0 }
 0x1e0   : > { %v509_v58 = vpop.f32.mrf.mxu0 }
 0x1e1   : > { %v510_v62 = vadd.f32 %v2794_v7, %v509_v58  ;;  %v2186_v10 = vpop.eup %2185  ;;  %1027 = vmatmul.bf16.gmra.mxu3 %v796_v9 }
 0x1e2   : > { %v925_v0 = vpop.f32.mrf.mxu1  ;;  %v1338_v1 = vpop.f32.mrf.mxu2  ;;  %v739_v28 = vsel %vm572_vm2, %v2186_v10, %v675_v19  ;;  %v2301_v10 = vld [vmem:[%s2425_s5 + $0x30] sm:$0xff] }
 0x1e3   : > { %2189 = vtanh.f32 %v510_v62  ;;  %v926_v3 = vadd.f32 %v2639_v12, %v925_v0  ;;  %v1339_v4 = vadd.f32 %v2837_v45, %v1338_v1  ;;  %v2188_v15 = vpop.eup %2187  ;;  %v676_v16 = vmax.f32 %v510_v62, 0.0 }
 0x1e4   : > { %v1181_v30 = vsel %vm572_vm2, %v2188_v15, %v1117_v20  ;;  %v245_v13 = vsel %vm238_vm0, %v2301_v10, 0.0 }
 0x1e5   : > { %2191 = vtanh.f32 %v926_v3  ;;  %v1560_v8 = vmul.f32 %v1496_v2, %v1339_v4  ;;  %v1118_v21 = vmax.f32 %v926_v3, 0.0  ;;  %v2933_v4 = vld [vmem:[%s3490_s2 + $0x1] ss:$0 sm:$0xff] }
 0x1e7   : > { %1625 = vst.msk [vmem:[%s2850_s30 + $0x10] sm:$0xff] %vm1622_vm4, %v1560_v8 }
 0x1e8   : > { %v512_v17 = vpop.f32.mrf.mxu0 }
 0x1e9   : > { %v2190_v18 = vpop.eup %2189  ;;  %v513_v32 = vadd.f32 %v2794_v7, %v512_v17 }
 0x1ea   : > { %v928_v22 = vpop.f32.mrf.mxu1  ;;  %v1340_v23 = vpop.f32.mrf.mxu2  ;;  %v740_v25 = vsel %vm572_vm2, %v2190_v18, %v676_v16  ;;  %v1500_v18 = vsel %vm1493_vm3, %v245_v13, 1.0 }
 0x1eb   : > { %v2192_v26 = vpop.eup %2191  ;;  %v1341_v27 = vadd.f32 %v2837_v45, %v1340_v23  ;;  %v784_v29 = vpack.c.bf16 %v740_v25, %v739_v28  ;;  %v929_v11 = vadd.f32 %v2639_v12, %v928_v22  ;;  %2193 = vtanh.f32 %v513_v32  ;;  %v2302_v25 = vld [vmem:[%s2425_s5 + $0x38] sm:$0xff] }
 0x1ec   : > { %v1182_v31 = vsel %vm572_vm2, %v2192_v26, %v1118_v21  ;;  %v677_v54 = vmax.f32 %v513_v32, 0.0  ;;  %v246_v26 = vsel %vm238_vm0, %v2302_v25, 0.0 }
 0x1ed   : > { %v1561_v33 = vmul.f32 %v1497_v24, %v1341_v27  ;;  %v1235_v34 = vpack.c.bf16 %v1182_v31, %v1181_v30  ;;  %967 = vmatmul.bf16.gmra.mxu1 %v784_v29  ;;  %2195 = vtanh.f32 %v929_v11  ;;  %v1119_v55 = vmax.f32 %v929_v11, 0.0 }
 0x1ef   : > { %1626 = vst.msk [vmem:[%s2850_s30 + $0x18] sm:$0xff] %vm1622_vm4, %v1561_v33  ;;  %1382 = vmatmul.bf16.gmra.mxu2 %v1235_v34  ;;  %v1501_v34 = vsel %vm1493_vm3, %v246_v26, 1.0 }
 0x1f0   : > { %v514_v37 = vpop.f32.mrf.mxu0 }
 0x1f1   : > { %v515_v38 = vadd.f32 %v2794_v7, %v514_v37  ;;  %v2194_v46 = vpop.eup %2193 }
 0x1f2   : > { %v930_v39 = vpop.f32.mrf.mxu1  ;;  %v1343_v40 = vpop.f32.mrf.mxu2  ;;  %v741_v62 = vsel %vm572_vm2, %v2194_v46, %v677_v54 }
 0x1f3   : > { %2197 = vtanh.f32 %v515_v38  ;;  %v931_v42 = vadd.f32 %v2639_v12, %v930_v39  ;;  %v1344_v43 = vadd.f32 %v2837_v45, %v1343_v40  ;;  %v2196_v49 = vpop.eup %2195  ;;  %v678_v51 = vmax.f32 %v515_v38, 0.0 }
 0x1f4   : > { %v1499_v12 = vsel %vm1493_vm3, %v244_v48, 1.0  ;;  %v993_v63 = vpop.f32.mrf.mxu3  ;;  %v1183_v2 = vsel %vm572_vm2, %v2196_v49, %v1119_v55 }
 0x1f5   : > { %2199 = vtanh.f32 %v931_v42  ;;  %v1562_v44 = vmul.f32 %v1498_v41, %v1344_v43  ;;  %v1120_v56 = vmax.f32 %v931_v42, 0.0  ;;  %v994_v9 = vadd.f32 %v2933_v4, %v993_v63 }
 0x1f7   : > { %1627 = vst.msk [vmem:[%s2850_s30 + $0x20] sm:$0xff] %vm1622_vm4, %v1562_v44  ;;  %v1145_v31 = vmax.f32 %v994_v9, 0.0 }
 0x1f8   : > { %v517_v52 = vpop.f32.mrf.mxu0 }
 0x1f9   : > { %v2198_v53 = vpop.eup %2197  ;;  %v518_v0 = vadd.f32 %v2794_v7, %v517_v52 }
 0x1fa   : > { %v933_v57 = vpop.f32.mrf.mxu1  ;;  %v1345_v58 = vpop.f32.mrf.mxu2  ;;  %v742_v59 = vsel %vm572_vm2, %v2198_v53, %v678_v51 }
 0x1fb   : > { %v2200_v60 = vpop.eup %2199  ;;  %v1346_v61 = vadd.f32 %v2837_v45, %v1345_v58  ;;  %v785_v1 = vpack.c.bf16 %v742_v59, %v741_v62  ;;  %v934_v5 = vadd.f32 %v2933_v4, %v933_v57  ;;  %2201 = vtanh.f32 %v518_v0 }
 0x1fc   : > { %v1184_v3 = vsel %vm572_vm2, %v2200_v60, %v1120_v56  ;;  %v995_v21 = vpop.f32.mrf.mxu3  ;;  %v679_v33 = vmax.f32 %v518_v0, 0.0  ;;  %v2303_v56 = vld [vmem:[%s2425_s5 + $0x40] sm:$0xff] }
 0x1fd   : > { %v1563_v6 = vmul.f32 %v1499_v12, %v1346_v61  ;;  %v1236_v8 = vpack.c.bf16 %v1184_v3, %v1183_v2  ;;  %972 = vmatmul.bf16.gmra.mxu1 %v785_v1  ;;  %2203 = vtanh.f32 %v934_v5  ;;  %v996_v22 = vadd.f32 %v2933_v4, %v995_v21 }
 0x1fe   : > { %2205 = vtanh.f32 %v994_v9  ;;  %v1121_v11 = vmax.f32 %v934_v5, 0.0  ;;  %v247_v57 = vsel %vm238_vm0, %v2303_v56, 0.0 }
 0x1ff   : > { %1628 = vst.msk [vmem:[%s2850_s30 + $0x28] sm:$0xff] %vm1622_vm4, %v1563_v6  ;;  %1387 = vmatmul.bf16.gmra.mxu2 %v1236_v8  ;;  %v1146_v39 = vmax.f32 %v996_v22, 0.0  ;;  %v1502_v63 = vsel %vm1493_vm3, %v247_v57, 1.0  ;;  %v2304_v6 = vld [vmem:[%s2425_s5 + $0x48] sm:$0xff] }
 0x200   : > { %v519_v14 = vpop.f32.mrf.mxu0  ;;  %v248_v8 = vsel %vm238_vm0, %v2304_v6, 0.0 }
 0x201   : > { %v520_v15 = vadd.f32 %v2794_v7, %v519_v14  ;;  %v2202_v24 = vpop.eup %2201 }
 0x202   : > { %v935_v16 = vpop.f32.mrf.mxu1  ;;  %v1348_v17 = vpop.f32.mrf.mxu2  ;;  %v743_v42 = vsel %vm572_vm2, %v2202_v24, %v679_v33 }
 0x203   : > { %2207 = vtanh.f32 %v520_v15  ;;  %v936_v19 = vadd.f32 %v2933_v4, %v935_v16  ;;  %v1349_v20 = vadd.f32 %v2837_v45, %v1348_v17  ;;  %v2204_v27 = vpop.eup %2203  ;;  %v680_v29 = vmax.f32 %v520_v15, 0.0 }
 0x204   : > { %v2206_v28 = vpop.eup %2205  ;;  %v998_v43 = vpop.f32.mrf.mxu3  ;;  %v1185_v47 = vsel %vm572_vm2, %v2204_v27, %v1121_v11  ;;  %v1503_v17 = vsel %vm1493_vm3, %v248_v8, 1.0 }
 0x205   : > { %2209 = vtanh.f32 %v936_v19  ;;  %v1564_v23 = vmul.f32 %v1500_v18, %v1349_v20  ;;  %v1122_v35 = vmax.f32 %v936_v19, 0.0  ;;  %v1209_v49 = vsel %vm572_vm2, %v2206_v28, %v1145_v31 }
 0x206   : > { %2211 = vtanh.f32 %v996_v22  ;;  %v999_v59 = vadd.f32 %v2933_v4, %v998_v43 }
 0x207   : > { %1629 = vst.msk [vmem:[%s2850_s30 + $0x30] sm:$0xff] %vm1622_vm4, %v1564_v23 }
 0x208   : > { %v522_v30 = vpop.f32.mrf.mxu0  ;;  %v1147_v24 = vmax.f32 %v999_v59, 0.0 }
 0x209   : > { %v2208_v32 = vpop.eup %2207  ;;  %v523_v51 = vadd.f32 %v2794_v7, %v522_v30 }
 0x20a   : > { %v938_v36 = vpop.f32.mrf.mxu1  ;;  %v1350_v37 = vpop.f32.mrf.mxu2  ;;  %v744_v38 = vsel %vm572_vm2, %v2208_v32, %v680_v29 }
 0x20b   : > { %v2210_v40 = vpop.eup %2209  ;;  %v1351_v41 = vadd.f32 %v2837_v45, %v1350_v37  ;;  %v786_v46 = vpack.c.bf16 %v744_v38, %v743_v42  ;;  %v939_v54 = vadd.f32 %v2933_v4, %v938_v36  ;;  %2213 = vtanh.f32 %v523_v51 }
 0x20c   : > { %v2212_v44 = vpop.eup %2211  ;;  %v1186_v48 = vsel %vm572_vm2, %v2210_v40, %v1122_v35  ;;  %v1000_v2 = vpop.f32.mrf.mxu3  ;;  %v681_v16 = vmax.f32 %v523_v51, 0.0 }
 0x20d   : > { %v1565_v52 = vmul.f32 %v1501_v34, %v1351_v41  ;;  %v1237_v53 = vpack.c.bf16 %v1186_v48, %v1185_v47  ;;  %977 = vmatmul.bf16.gmra.mxu1 %v786_v46  ;;  %v1210_v55 = vsel %vm572_vm2, %v2212_v44, %v1146_v39  ;;  %2215 = vtanh.f32 %v939_v54  ;;  %v2305_v39 = vld [vmem:[%s2425_s5 + $0x50] sm:$0xff] }
 0x20e   : > { %v1249_v58 = vpack.c.bf16 %v1210_v55, %v1209_v49  ;;  %v1001_v3 = vadd.f32 %v2933_v4, %v1000_v2  ;;  %v1123_v19 = vmax.f32 %v939_v54, 0.0  ;;  %v249_v40 = vsel %vm238_vm0, %v2305_v39, 0.0 }
 0x20f   : > { %1630 = vst.msk [vmem:[%s2850_s30 + $0x38] sm:$0xff] %vm1622_vm4, %v1565_v52  ;;  %1392 = vmatmul.bf16.gmra.mxu2 %v1237_v53  ;;  %v1504_v48 = vsel %vm1493_vm3, %v249_v40, 1.0 }
 0x210   : > { %v524_v12 = vpop.f32.mrf.mxu0  ;;  %1452 = vmatmul.bf16.vlgmr.msra.gmra.mxu3 %v1249_v58  ;;  %v1148_v28 = vmax.f32 %v1001_v3, 0.0 }
 0x211   : > { %v525_v60 = vadd.f32 %v2794_v7, %v524_v12  ;;  %v2214_v9 = vpop.eup %2213 }
 0x212   : > { %v940_v61 = vpop.f32.mrf.mxu1  ;;  %v1353_v62 = vpop.f32.mrf.mxu2  ;;  %v745_v27 = vsel %vm572_vm2, %v2214_v9, %v681_v16 }
 0x213   : > { %2217 = vtanh.f32 %v525_v60  ;;  %v941_v0 = vadd.f32 %v2933_v4, %v940_v61  ;;  %v1354_v1 = vadd.f32 %v2837_v45, %v1353_v62  ;;  %v2216_v10 = vpop.eup %2215  ;;  %v682_v13 = vmax.f32 %v525_v60, 0.0 }
 0x214   : > { %2219 = vtanh.f32 %v999_v59  ;;  %v1003_v29 = vpop.f32.mrf.mxu3  ;;  %v1187_v33 = vsel %vm572_vm2, %v2216_v10, %v1123_v19 }
 0x215   : > { %2221 = vtanh.f32 %v941_v0  ;;  %v1566_v5 = vmul.f32 %v1502_v63, %v1354_v1  ;;  %v1124_v20 = vmax.f32 %v941_v0, 0.0  ;;  %v1004_v37 = vadd.f32 %v2933_v4, %v1003_v29 }
 0x216   : > { %2223 = vtanh.f32 %v1001_v3 }
 0x217   : > { %1631 = vst.msk [vmem:[%s2850_s30 + $0x40] sm:$0xff] %vm1622_vm4, %v1566_v5  ;;  %v1149_v60 = vmax.f32 %v1004_v37, 0.0 }
 0x218   : > { %v527_v14 = vpop.f32.mrf.mxu0 }
 0x219   : > { %v2218_v15 = vpop.eup %2217  ;;  %v528_v31 = vadd.f32 %v2794_v7, %v527_v14 }
 0x21a   : > { %v2220_v18 = vpop.eup %2219  ;;  %v943_v21 = vpop.f32.mrf.mxu1  ;;  %v746_v23 = vsel %vm572_vm2, %v2218_v15, %v682_v13 }
 0x21b   : > { %v1355_v22 = vpop.f32.mrf.mxu2  ;;  %v2222_v25 = vpop.eup %2221  ;;  %v787_v32 = vpack.c.bf16 %v746_v23, %v745_v27  ;;  %v944_v11 = vadd.f32 %v2933_v4, %v943_v21  ;;  %v1211_v38 = vsel %vm572_vm2, %v2220_v18, %v1147_v24  ;;  %2225 = vtanh.f32 %v528_v31 }
 0x21c   : > { %v1356_v26 = vadd.f32 %v2837_v45, %v1355_v22  ;;  %v2224_v30 = vpop.eup %2223  ;;  %v1188_v34 = vsel %vm572_vm2, %v2222_v25, %v1124_v20  ;;  %v1005_v52 = vpop.f32.mrf.mxu3  ;;  %v683_v12 = vmax.f32 %v528_v31, 0.0  ;;  %v2307_v22 = vld [vmem:[%s2425_s5 + $0x60] sm:$0xff] }
 0x21d   : > { %v1238_v36 = vpack.c.bf16 %v1188_v34, %v1187_v33  ;;  %982 = vmatmul.bf16.gmra.mxu1 %v787_v32  ;;  %v1212_v41 = vsel %vm572_vm2, %v2224_v30, %v1148_v28  ;;  %2227 = vtanh.f32 %v944_v11  ;;  %v1006_v53 = vadd.f32 %v2933_v4, %v1005_v52  ;;  %v2308_v34 = vld [vmem:[%s2425_s5 + $0x68] sm:$0xff] }
 0x21e   : > { %v1567_v35 = vmul.f32 %v1503_v17, %v1356_v26  ;;  %v1250_v43 = vpack.c.bf16 %v1212_v41, %v1211_v38  ;;  %2229 = vtanh.f32 %v1004_v37  ;;  %v1125_v62 = vmax.f32 %v944_v11, 0.0 }
 0x21f   : > { %1397 = vmatmul.bf16.gmra.mxu2 %v1238_v36  ;;  %v1150_v6 = vmax.f32 %v1006_v53, 0.0  ;;  %v251_v23 = vsel %vm238_vm0, %v2307_v22, 0.0  ;;  %v252_v11 = vsel %vm238_vm0, %v2308_v34, 0.0 }
 0x220   : > { %1632 = vst.msk [vmem:[%s2850_s30 + $0x48] sm:$0xff] %vm1622_vm4, %v1567_v35  ;;  %v529_v42 = vpop.f32.mrf.mxu0  ;;  %1457 = vmatmul.bf16.gmra.mxu3 %v1250_v43  ;;  %v1506_v28 = vsel %vm1493_vm3, %v251_v23, 1.0 }
 0x221   : > { %v530_v44 = vadd.f32 %v2794_v7, %v529_v42  ;;  %v2226_v55 = vpop.eup %2225  ;;  %v2306_v7 = vld [vmem:[%s2425_s5 + $0x58] sm:$0xff]  ;;  %v1507_v42 = vsel %vm1493_vm3, %v252_v11, 1.0 }
 0x222   : > { %v945_v46 = vpop.f32.mrf.mxu1  ;;  %v250_v56 = vsel %vm238_vm0, %v2306_v7, 0.0  ;;  %v747_v3 = vsel %vm572_vm2, %v2226_v55, %v683_v12 }
 0x223   : > { %v1358_v47 = vpop.f32.mrf.mxu2  ;;  %2231 = vtanh.f32 %v530_v44  ;;  %v946_v49 = vadd.f32 %v2933_v4, %v945_v46  ;;  %v2228_v57 = vpop.eup %2227  ;;  %v684_v59 = vmax.f32 %v530_v44, 0.0  ;;  %v1505_v63 = vsel %vm1493_vm3, %v250_v56, 1.0  ;;  %v2309_v56 = vld [vmem:[%s2425_s5 + $0x70] sm:$0xff] }
 0x224   : > { %v1359_v51 = vadd.f32 %v2837_v45, %v1358_v47  ;;  %v2230_v58 = vpop.eup %2229  ;;  %v1008_v13 = vpop.f32.mrf.mxu3  ;;  %v1189_v15 = vsel %vm572_vm2, %v2228_v57, %v1125_v62  ;;  %v253_v57 = vsel %vm238_vm0, %v2309_v56, 0.0 }
 0x225   : > { %2233 = vtanh.f32 %v946_v49  ;;  %v1126_v0 = vmax.f32 %v946_v49, 0.0  ;;  %v1213_v17 = vsel %vm572_vm2, %v2230_v58, %v1149_v60  ;;  %v1009_v24 = vadd.f32 %v2933_v4, %v1008_v13 }
 0x226   : > { %v1568_v54 = vmul.f32 %v1504_v48, %v1359_v51  ;;  %2235 = vtanh.f32 %v1006_v53 }
 0x227   : > { %v1151_v36 = vmax.f32 %v1009_v24, 0.0 }
 0x228   : > { %1633 = vst.msk [vmem:[%s2850_s30 + $0x50] sm:$0xff] %vm1622_vm4, %v1568_v54 }
 0x229   : > { %v2232_v61 = vpop.eup %2231 }
 0x22a   : > { %v948_v1 = vpop.f32.mrf.mxu1  ;;  %v748_v5 = vsel %vm572_vm2, %v2232_v61, %v684_v59  ;;  %v1508_v61 = vsel %vm1493_vm3, %v253_v57, 1.0 }
 0x22b   : > { %v1360_v2 = vpop.f32.mrf.mxu2  ;;  %v2234_v8 = vpop.eup %2233  ;;  %v788_v10 = vpack.c.bf16 %v748_v5, %v747_v3  ;;  %v949_v20 = vadd.f32 %v2933_v4, %v948_v1  ;;  %v2310_v3 = vld [vmem:[%s2425_s5 + $0x78] sm:$0xff] }
 0x22c   : > { %v1361_v9 = vadd.f32 %v2837_v45, %v1360_v2  ;;  %v2236_v14 = vpop.eup %2235  ;;  %v1190_v16 = vsel %vm572_vm2, %v2234_v8, %v1126_v0  ;;  %v1010_v31 = vpop.f32.mrf.mxu3  ;;  %v254_v5 = vsel %vm238_vm0, %v2310_v3, 0.0 }
 0x22d   : > { %v1239_v19 = vpack.c.bf16 %v1190_v16, %v1189_v15  ;;  %987 = vmatmul.bf16.gmra.mxu1 %v788_v10  ;;  %v1214_v21 = vsel %vm572_vm2, %v2236_v14, %v1150_v6  ;;  %2237 = vtanh.f32 %v949_v20  ;;  %v1011_v32 = vadd.f32 %v2933_v4, %v1010_v31 }
 0x22e   : > { %v1569_v18 = vmul.f32 %v1505_v63, %v1361_v9  ;;  %v1251_v25 = vpack.c.bf16 %v1214_v21, %v1213_v17  ;;  %2239 = vtanh.f32 %v1009_v24  ;;  %v1127_v38 = vmax.f32 %v949_v20, 0.0 }
 0x22f   : > { %1402 = vmatmul.bf16.gmra.mxu2 %v1239_v19  ;;  %v1152_v43 = vmax.f32 %v1011_v32, 0.0  ;;  %v1509_v16 = vsel %vm1493_vm3, %v254_v5, 1.0 }
 0x230   : > { %1634 = vst.msk [vmem:[%s2850_s30 + $0x58] sm:$0xff] %vm1622_vm4, %v1569_v18  ;;  %1462 = vmatmul.bf16.gmra.mxu3 %v1251_v25 }
 0x232   : > { %v950_v26 = vpop.f32.mrf.mxu1 }
 0x233   : > { %v1363_v27 = vpop.f32.mrf.mxu2  ;;  %v951_v29 = vadd.f32 %v2933_v4, %v950_v26  ;;  %v2238_v35 = vpop.eup %2237 }
 0x234   : > { %v1364_v30 = vadd.f32 %v2837_v45, %v1363_v27  ;;  %v2240_v37 = vpop.eup %2239  ;;  %v1013_v47 = vpop.f32.mrf.mxu3  ;;  %v1191_v49 = vsel %vm572_vm2, %v2238_v35, %v1127_v38 }
 0x235   : > { %2241 = vtanh.f32 %v951_v29  ;;  %v1128_v39 = vmax.f32 %v951_v29, 0.0  ;;  %v1215_v52 = vsel %vm572_vm2, %v2240_v37, %v1151_v36  ;;  %v1014_v58 = vadd.f32 %v2933_v4, %v1013_v47  ;;  %v2311_v29 = vld [vmem:[%s2425_s5 + $0x80] sm:$0xff] }
 0x236   : > { %v1570_v33 = vmul.f32 %v1506_v28, %v1364_v30  ;;  %2243 = vtanh.f32 %v1011_v32  ;;  %v255_v30 = vsel %vm238_vm0, %v2311_v29, 0.0 }
 0x237   : > { %v1153_v8 = vmax.f32 %v1014_v58, 0.0  ;;  %v1510_v11 = vsel %vm1493_vm3, %v255_v30, 1.0 }
 0x238   : > { %1635 = vst.msk [vmem:[%s2850_s30 + $0x60] sm:$0xff] %vm1622_vm4, %v1570_v33 }
 0x23a   : > { %v953_v40 = vpop.f32.mrf.mxu1 }
 0x23b   : > { %v1365_v41 = vpop.f32.mrf.mxu2  ;;  %v2242_v44 = vpop.eup %2241  ;;  %v954_v55 = vadd.f32 %v2933_v4, %v953_v40  ;;  %v2312_v40 = vld [vmem:[%s2425_s5 + $0x88] sm:$0xff] }
 0x23c   : > { %v1366_v46 = vadd.f32 %v2837_v45, %v1365_v41  ;;  %v2244_v48 = vpop.eup %2243  ;;  %v1192_v51 = vsel %vm572_vm2, %v2242_v44, %v1128_v39  ;;  %v1015_v0 = vpop.f32.mrf.mxu3  ;;  %v256_v41 = vsel %vm238_vm0, %v2312_v40, 0.0 }
 0x23d   : > { %v1240_v54 = vpack.c.bf16 %v1192_v51, %v1191_v49  ;;  %v1216_v7 = vsel %vm572_vm2, %v2244_v48, %v1152_v43  ;;  %2245 = vtanh.f32 %v954_v55  ;;  %v1016_v1 = vadd.f32 %v2933_v4, %v1015_v0 }
 0x23e   : > { %v1571_v53 = vmul.f32 %v1507_v42, %v1366_v46  ;;  %v1252_v12 = vpack.c.bf16 %v1216_v7, %v1215_v52  ;;  %2247 = vtanh.f32 %v1014_v58  ;;  %v1129_v10 = vmax.f32 %v954_v55, 0.0 }
 0x23f   : > { %1407 = vmatmul.bf16.gmra.mxu2 %v1240_v54  ;;  %v1154_v17 = vmax.f32 %v1016_v1, 0.0  ;;  %v1511_v49 = vsel %vm1493_vm3, %v256_v41, 1.0 }
 0x240   : > { %1636 = vst.msk [vmem:[%s2850_s30 + $0x68] sm:$0xff] %vm1622_vm4, %v1571_v53  ;;  %1467 = vmatmul.bf16.gmra.mxu3 %v1252_v12 }
 0x242   : > { %v955_v59 = vpop.f32.mrf.mxu1 }
 0x243   : > { %v1368_v60 = vpop.f32.mrf.mxu2  ;;  %v956_v62 = vadd.f32 %v2933_v4, %v955_v59  ;;  %v2246_v6 = vpop.eup %2245 }
 0x244   : > { %v1369_v63 = vadd.f32 %v2837_v45, %v1368_v60  ;;  %v2248_v9 = vpop.eup %2247  ;;  %v1018_v20 = vpop.f32.mrf.mxu3  ;;  %v1193_v22 = vsel %vm572_vm2, %v2246_v6, %v1129_v10 }
 0x245   : > { %2249 = vtanh.f32 %v956_v62  ;;  %v1130_v13 = vmax.f32 %v956_v62, 0.0  ;;  %v1217_v24 = vsel %vm572_vm2, %v2248_v9, %v1153_v8  ;;  %v1019_v31 = vadd.f32 %v2933_v4, %v1018_v20 }
 0x246   : > { %v1572_v2 = vmul.f32 %v1508_v61, %v1369_v63  ;;  %2251 = vtanh.f32 %v1016_v1  ;;  %v2313_v61 = vld [vmem:[%s2425_s5 + $0x90] sm:$0xff] }
 0x247   : > { %v1155_v43 = vmax.f32 %v1019_v31, 0.0  ;;  %v257_v62 = vsel %vm238_vm0, %v2313_v61, 0.0 }
 0x248   : > { %1637 = vst.msk [vmem:[%s2850_s30 + $0x70] sm:$0xff] %vm1622_vm4, %v1572_v2  ;;  %v1512_v3 = vsel %vm1493_vm3, %v257_v62, 1.0 }
 0x24a   : > { %v958_v14 = vpop.f32.mrf.mxu1 }
 0x24b   : > { %v1370_v15 = vpop.f32.mrf.mxu2  ;;  %v2250_v18 = vpop.eup %2249  ;;  %v959_v27 = vadd.f32 %v2933_v4, %v958_v14  ;;  %v2314_v14 = vld [vmem:[%s2425_s5 + $0x98] sm:$0xff] }
 0x24c   : > { %v1371_v19 = vadd.f32 %v2837_v45, %v1370_v15  ;;  %v2252_v21 = vpop.eup %2251  ;;  %v1194_v23 = vsel %vm572_vm2, %v2250_v18, %v1130_v13  ;;  %v1020_v37 = vpop.f32.mrf.mxu3  ;;  %v258_v15 = vsel %vm238_vm0, %v2314_v14, 0.0 }
 0x24d   : > { %v1241_v26 = vpack.c.bf16 %v1194_v23, %v1193_v22  ;;  %v1218_v28 = vsel %vm572_vm2, %v2252_v21, %v1154_v17  ;;  %2253 = vtanh.f32 %v959_v27  ;;  %v1021_v38 = vadd.f32 %v2933_v4, %v1020_v37 }
 0x24e   : > { %v1573_v25 = vmul.f32 %v1509_v16, %v1371_v19  ;;  %v1253_v32 = vpack.c.bf16 %v1218_v28, %v1217_v24  ;;  %2255 = vtanh.f32 %v1019_v31  ;;  %v1131_v46 = vmax.f32 %v959_v27, 0.0 }
 0x24f   : > { %1412 = vmatmul.bf16.gmra.mxu2 %v1241_v26  ;;  %v1156_v51 = vmax.f32 %v1021_v38, 0.0  ;;  %v1513_v20 = vsel %vm1493_vm3, %v258_v15, 1.0 }
 0x250   : > { %1638 = vst.msk [vmem:[%s2850_s30 + $0x78] sm:$0xff] %vm1622_vm4, %v1573_v25  ;;  %1472 = vmatmul.bf16.gmra.mxu3 %v1253_v32 }
 0x252   : > { %v960_v33 = vpop.f32.mrf.mxu1 }
 0x253   : > { %v1373_v34 = vpop.f32.mrf.mxu2  ;;  %v961_v35 = vadd.f32 %v2933_v4, %v960_v33  ;;  %v2254_v42 = vpop.eup %2253 }
 0x254   : > { %v1374_v36 = vadd.f32 %v2837_v45, %v1373_v34  ;;  %v2256_v44 = vpop.eup %2255  ;;  %v1195_v7 = vsel %vm572_vm2, %v2254_v42, %v1131_v46  ;;  %v1023_v57 = vpop.f32.mrf.mxu3 }
 0x255   : > { %2257 = vtanh.f32 %v961_v35  ;;  %v1132_v47 = vmax.f32 %v961_v35, 0.0  ;;  %v1219_v58 = vsel %vm572_vm2, %v2256_v44, %v1155_v43  ;;  %v1024_v63 = vadd.f32 %v2933_v4, %v1023_v57 }
 0x256   : > { %v1574_v39 = vmul.f32 %v1510_v11, %v1374_v36  ;;  %2259 = vtanh.f32 %v1021_v38  ;;  %v2315_v11 = vld [vmem:[%s2425_s5 + $0xa0] sm:$0xff] }
 0x257   : > { %2261 = vtanh.f32 %v1024_v63  ;;  %v1157_v16 = vmax.f32 %v1024_v63, 0.0  ;;  %v259_v35 = vsel %vm238_vm0, %v2315_v11, 0.0 }
 0x258   : > { %1639 = vst.msk [vmem:[%s2850_s30 + $0x80] sm:$0xff] %vm1622_vm4, %v1574_v39  ;;  %v1514_v40 = vsel %vm1493_vm3, %v259_v35, 1.0 }
 0x25a   : > { %v963_v53 = vpop.f32.mrf.mxu1 }
 0x25b   : > { %v1375_v48 = vpop.f32.mrf.mxu2  ;;  %v2258_v52 = vpop.eup %2257  ;;  %v964_v1 = vadd.f32 %v2933_v4, %v963_v53 }
 0x25c   : > { %v1376_v54 = vadd.f32 %v2837_v45, %v1375_v48  ;;  %v2260_v55 = vpop.eup %2259  ;;  %v1196_v56 = vsel %vm572_vm2, %v2258_v52, %v1132_v47  ;;  %v1025_v9 = vpop.f32.mrf.mxu3  ;;  %v2316_v48 = vld [vmem:[%s2425_s5 + $0xa8] sm:$0xff] }
 0x25d   : > { %v1242_v59 = vpack.c.bf16 %v1196_v56, %v1195_v7  ;;  %v1220_v60 = vsel %vm572_vm2, %v2260_v55, %v1156_v51  ;;  %2263 = vtanh.f32 %v964_v1  ;;  %v1026_v13 = vadd.f32 %v2933_v4, %v1025_v9  ;;  %v2262_v17 = vpop.eup %2261 }
 0x25e   : > { %v1575_v12 = vmul.f32 %v1511_v49, %v1376_v54  ;;  %v1254_v0 = vpack.c.bf16 %v1220_v60, %v1219_v58  ;;  %v1133_v22 = vmax.f32 %v964_v1, 0.0  ;;  %v1221_v28 = vsel %vm572_vm2, %v2262_v17, %v1157_v16  ;;  %v2318_v17 = vld [vmem:[%s2425_s5 + $0xb8] sm:$0xff] }
 0x25f   : > { %1417 = vmatmul.bf16.gmra.mxu2 %v1242_v59  ;;  %v1158_v21 = vmax.f32 %v1026_v13, 0.0  ;;  %v260_v49 = vsel %vm238_vm0, %v2316_v48, 0.0  ;;  %v2323_v48 = vld [vmem:[%s2425_s5 + $0x188] sm:$0xff] }
 0x260   : > { %1640 = vst.msk [vmem:[%s2850_s30 + $0x88] sm:$0xff] %vm1622_vm4, %v1575_v12  ;;  %1477 = vmatmul.bf16.gmra.mxu3 %v1254_v0  ;;  %v1515_v55 = vsel %vm1493_vm3, %v260_v49, 1.0  ;;  %v288_v49 = vsel %vm238_vm0, %v2323_v48, 0.0 }
 0x262   : > { %v965_v5 = vpop.f32.mrf.mxu1 }
 0x263   : > { %v1378_v2 = vpop.f32.mrf.mxu2  ;;  %v966_v8 = vadd.f32 %v2933_v4, %v965_v5  ;;  %v2264_v18 = vpop.eup %2263 }
 0x264   : > { %v1379_v6 = vadd.f32 %v2837_v45, %v1378_v2  ;;  %v1028_v27 = vpop.f32.mrf.mxu3  ;;  %v1197_v31 = vsel %vm572_vm2, %v2264_v18, %v1133_v22  ;;  %v262_v18 = vsel %vm238_vm0, %v2318_v17, 0.0 }
 0x265   : > { %2265 = vtanh.f32 %v966_v8  ;;  %v1134_v23 = vmax.f32 %v966_v8, 0.0  ;;  %v1029_v36 = vadd.f32 %v2933_v4, %v1028_v27 }
 0x266   : > { %v1576_v10 = vmul.f32 %v1512_v3, %v1379_v6  ;;  %2267 = vtanh.f32 %v1026_v13  ;;  %v2317_v3 = vld [vmem:[%s2425_s5 + $0xb0] sm:$0xff] }
 0x267   : > { %2269 = vtanh.f32 %v1029_v36  ;;  %v1159_v51 = vmax.f32 %v1029_v36, 0.0  ;;  %v261_v5 = vsel %vm238_vm0, %v2317_v3, 0.0 }
 0x268   : > { %1641 = vst.msk [vmem:[%s2850_s30 + $0x90] sm:$0xff] %vm1622_vm4, %v1576_v10  ;;  %v1516_v10 = vsel %vm1493_vm3, %v261_v5, 1.0 }
 0x26a   : > { %v968_v24 = vpop.f32.mrf.mxu1 }
 0x26b   : > { %v1380_v19 = vpop.f32.mrf.mxu2  ;;  %v2266_v26 = vpop.eup %2265  ;;  %v969_v38 = vadd.f32 %v2933_v4, %v968_v24  ;;  %v3178_v24 = vld [vmem:[%s3490_s2 + $0x2] ss:$0 sm:$0xff] }
 0x26c   : > { %v1381_v25 = vadd.f32 %v2837_v45, %v1380_v19  ;;  %v2268_v29 = vpop.eup %2267  ;;  %v1198_v32 = vsel %vm572_vm2, %v2266_v26, %v1134_v23  ;;  %v1030_v44 = vpop.f32.mrf.mxu3 }
 0x26d   : > { %v1243_v33 = vpack.c.bf16 %v1198_v32, %v1197_v31  ;;  %v1222_v34 = vsel %vm572_vm2, %v2268_v29, %v1158_v21  ;;  %2271 = vtanh.f32 %v969_v38  ;;  %v1031_v47 = vadd.f32 %v2933_v4, %v1030_v44  ;;  %v2270_v52 = vpop.eup %2269  ;;  %v2320_v31 = vld [vmem:[%s2425_s5 + $0xc0] sm:$0xff]  ;;  %v2322_v44 = vld [vmem:[%s2425_s5 + $0xc8] sm:$0xff] }
 0x26e   : > { %v1577_v30 = vmul.f32 %v1513_v20, %v1381_v25  ;;  %v1255_v37 = vpack.c.bf16 %v1222_v34, %v1221_v28  ;;  %v1135_v56 = vmax.f32 %v969_v38, 0.0  ;;  %v1223_v60 = vsel %vm572_vm2, %v2270_v52, %v1159_v51  ;;  %v2321_v34 = vld [vmem:[%s2425_s5 + $0x180] sm:$0xff] }
 0x26f   : > { %1422 = vmatmul.bf16.gmra.mxu2 %v1243_v33  ;;  %v1160_v7 = vmax.f32 %v1031_v47, 0.0  ;;  %v1517_v21 = vsel %vm1493_vm3, %v262_v18, 1.0  ;;  %v263_v32 = vsel %vm238_vm0, %v2320_v31, 0.0  ;;  %v287_v11 = vsel %vm238_vm0, %v2321_v34, 0.0 }
 0x270   : > { %1642 = vst.msk [vmem:[%s2850_s30 + $0x98] sm:$0xff] %vm1622_vm4, %v1577_v30  ;;  %1482 = vmatmul.bf16.gmra.mxu3 %v1255_v37  ;;  %v1518_v36 = vsel %vm1493_vm3, %v263_v32, 1.0 }
 0x272   : > { %v970_v41 = vpop.f32.mrf.mxu1 }
 0x273   : > { %v1383_v39 = vpop.f32.mrf.mxu2  ;;  %v971_v43 = vadd.f32 %v2933_v4, %v970_v41  ;;  %v2272_v53 = vpop.eup %2271  ;;  %v1542_v41 = vsel %vm1493_vm3, %v287_v11, 1.0 }
 0x274   : > { %v1384_v42 = vadd.f32 %v2837_v45, %v1383_v39  ;;  %v1199_v63 = vsel %vm572_vm2, %v2272_v53, %v1135_v56 }
 0x275   : > { %2273 = vtanh.f32 %v971_v43  ;;  %v1136_v57 = vmax.f32 %v971_v43, 0.0 }
 0x276   : > { %v1578_v46 = vmul.f32 %v1514_v40, %v1384_v42  ;;  %2275 = vtanh.f32 %v1031_v47 }
 0x278   : > { %1643 = vst.msk [vmem:[%s2850_s30 + $0xa0] sm:$0xff] %vm1622_vm4, %v1578_v46  ;;  %v264_v46 = vsel %vm238_vm0, %v2322_v44, 0.0  ;;  %v2329_v44 = vld [vmem:[%s2425_s5 + $0x1a0] sm:$0xff] }
 0x279   : > { %v1519_v53 = vsel %vm1493_vm3, %v264_v46, 1.0  ;;  %v291_v46 = vsel %vm238_vm0, %v2329_v44, 0.0 }
 0x27a   : > { %v973_v58 = vpop.f32.mrf.mxu1 }
 0x27b   : > { %v1385_v54 = vpop.f32.mrf.mxu2  ;;  %v2274_v59 = vpop.eup %2273  ;;  %v974_v8 = vadd.f32 %v2933_v4, %v973_v58 }
 0x27c   : > { %v1386_v12 = vadd.f32 %v2837_v45, %v1385_v54  ;;  %v2276_v61 = vpop.eup %2275  ;;  %v1200_v0 = vsel %vm572_vm2, %v2274_v59, %v1136_v57 }
 0x27d   : > { %v1244_v1 = vpack.c.bf16 %v1200_v0, %v1199_v63  ;;  %v1224_v2 = vsel %vm572_vm2, %v2276_v61, %v1160_v7  ;;  %2277 = vtanh.f32 %v974_v8  ;;  %v1137_v22 = vmax.f32 %v974_v8, 0.0  ;;  %v2324_v0 = vld [vmem:[%s2425_s5 + $0xd0] sm:$0xff] }
 0x27e   : > { %v1579_v62 = vmul.f32 %v1515_v55, %v1386_v12  ;;  %v1256_v6 = vpack.c.bf16 %v1224_v2, %v1223_v60  ;;  %v1543_v12 = vsel %vm1493_vm3, %v288_v49, 1.0  ;;  %v2325_v8 = vld [vmem:[%s2425_s5 + $0x190] sm:$0xff] }
 0x27f   : > { %1427 = vmatmul.bf16.gmra.mxu2 %v1244_v1  ;;  %v265_v1 = vsel %vm238_vm0, %v2324_v0, 0.0 }
 0x280   : > { %1644 = vst.msk [vmem:[%s2850_s30 + $0xa8] sm:$0xff] %vm1622_vm4, %v1579_v62  ;;  %1487 = vmatmul.bf16.gmra.mxu3 %v1256_v6  ;;  %v1520_v6 = vsel %vm1493_vm3, %v265_v1, 1.0 }
 0x282   : > { %v975_v13 = vpop.f32.mrf.mxu1 }
 0x283   : > { %v1388_v9 = vpop.f32.mrf.mxu2  ;;  %v976_v15 = vadd.f32 %v2933_v4, %v975_v13  ;;  %v2278_v19 = vpop.eup %2277 }
 0x284   : > { %v1389_v14 = vadd.f32 %v2837_v45, %v1388_v9  ;;  %v1201_v28 = vsel %vm572_vm2, %v2278_v19, %v1137_v22  ;;  %v289_v9 = vsel %vm238_vm0, %v2325_v8, 0.0  ;;  %v2326_v19 = vld [vmem:[%s2425_s5 + $0xd8] sm:$0xff] }
 0x285   : > { %2279 = vtanh.f32 %v976_v15  ;;  %v1138_v45 = vmax.f32 %v976_v15, 0.0  ;;  %v1544_v17 = vsel %vm1493_vm3, %v289_v9, 1.0  ;;  %v2332_v9 = vld [vmem:[%s2425_s5 + $0xf0] sm:$0xff] }
 0x286   : > { %v1580_v16 = vmul.f32 %v1516_v10, %v1389_v14 }
 0x288   : > { %1645 = vst.msk [vmem:[%s2850_s30 + $0xb0] sm:$0xff] %vm1622_vm4, %v1580_v16 }
 0x28a   : > { %v978_v23 = vpop.f32.mrf.mxu1 }
 0x28b   : > { %v1390_v20 = vpop.f32.mrf.mxu2  ;;  %v2280_v26 = vpop.eup %2279  ;;  %v979_v33 = vadd.f32 %v2933_v4, %v978_v23 }
 0x28c   : > { %v1391_v25 = vadd.f32 %v3178_v24, %v1390_v20  ;;  %v1202_v29 = vsel %vm572_vm2, %v2280_v26, %v1138_v45  ;;  %v266_v20 = vsel %vm238_vm0, %v2326_v19, 0.0 }
 0x28d   : > { %v1245_v30 = vpack.c.bf16 %v1202_v29, %v1201_v28  ;;  %2281 = vtanh.f32 %v979_v33  ;;  %v1139_v54 = vmax.f32 %v979_v33, 0.0  ;;  %v1521_v23 = vsel %vm1493_vm3, %v266_v20, 1.0 }
 0x28e   : > { %v1581_v27 = vmul.f32 %v1517_v21, %v1391_v25  ;;  %v2327_v25 = vld [vmem:[%s2425_s5 + $0x198] sm:$0xff] }
 0x28f   : > { %1432 = vmatmul.bf16.gmra.mxu2 %v1245_v30  ;;  %v290_v26 = vsel %vm238_vm0, %v2327_v25, 0.0 }
 0x290   : > { %1646 = vst.msk [vmem:[%s2850_s30 + $0xb8] sm:$0xff] %vm1622_vm4, %v1581_v27 }
 0x292   : > { %v980_v37 = vpop.f32.mrf.mxu1 }
 0x293   : > { %v1393_v35 = vpop.f32.mrf.mxu2  ;;  %v981_v39 = vadd.f32 %v2933_v4, %v980_v37  ;;  %v1453_v40 = vpop.f32.mrf.mxu3 }
 0x294   : > { %v1394_v38 = vadd.f32 %v3178_v24, %v1393_v35  ;;  %v1454_v43 = vadd.f32 %v3178_v24, %v1453_v40  ;;  %v2282_v51 = vpop.eup %2281  ;;  %v1545_v35 = vsel %vm1493_vm3, %v290_v26, 1.0 }
 0x295   : > { %2283 = vtanh.f32 %v981_v39  ;;  %v1140_v55 = vmax.f32 %v981_v39, 0.0  ;;  %v1203_v60 = vsel %vm572_vm2, %v2282_v51, %v1139_v54 }
 0x296   : > { %v1582_v42 = vmul.f32 %v1518_v36, %v1394_v38  ;;  %v1606_v47 = vmul.f32 %v1542_v41, %v1454_v43  ;;  %v2328_v38 = vld [vmem:[%s2425_s5 + $0xe0] sm:$0xff] }
 0x297   : > { %v267_v39 = vsel %vm238_vm0, %v2328_v38, 0.0 }
 0x298   : > { %1647 = vst.msk [vmem:[%s2850_s30 + $0xc0] sm:$0xff] %vm1622_vm4, %v1582_v42  ;;  %v1522_v43 = vsel %vm1493_vm3, %v267_v39, 1.0  ;;  %v2337_v39 = vld [vmem:[%s2425_s5 + $0x1c0] sm:$0xff] }
 0x299   : > { %1671 = vst.msk [vmem:[%s2850_s30 + $0x180] sm:$0xff] %vm1622_vm4, %v1606_v47 }
 0x29a   : > { %v983_v7 = vpop.f32.mrf.mxu1 }
 0x29b   : > { %v1395_v52 = vpop.f32.mrf.mxu2  ;;  %v2284_v57 = vpop.eup %2283  ;;  %v984_v3 = vadd.f32 %v2933_v4, %v983_v7 }
 0x29c   : > { %v1396_v56 = vadd.f32 %v3178_v24, %v1395_v52  ;;  %v1455_v58 = vpop.f32.mrf.mxu3  ;;  %v1204_v61 = vsel %vm572_vm2, %v2284_v57, %v1140_v55  ;;  %v2330_v55 = vld [vmem:[%s2425_s5 + $0xe8] sm:$0xff] }
 0x29d   : > { %v1456_v62 = vadd.f32 %v3178_v24, %v1455_v58  ;;  %v1246_v63 = vpack.c.bf16 %v1204_v61, %v1203_v60  ;;  %2285 = vtanh.f32 %v984_v3  ;;  %v1141_v27 = vmax.f32 %v984_v3, 0.0 }
 0x29e   : > { %v1583_v59 = vmul.f32 %v1519_v53, %v1396_v56  ;;  %v1546_v53 = vsel %vm1493_vm3, %v291_v46, 1.0  ;;  %v268_v7 = vsel %vm238_vm0, %v2330_v55, 0.0 }
 0x29f   : > { %v1607_v2 = vmul.f32 %v1543_v12, %v1456_v62  ;;  %1437 = vmatmul.bf16.gmra.mxu2 %v1246_v63  ;;  %v2331_v12 = vld [vmem:[%s2425_s5 + $0x1a8] sm:$0xff] }
 0x2a0   : > { %1648 = vst.msk [vmem:[%s2850_s30 + $0xc8] sm:$0xff] %vm1622_vm4, %v1583_v59  ;;  %v292_v59 = vsel %vm238_vm0, %v2331_v12, 0.0 }
 0x2a1   : > { %1672 = vst.msk [vmem:[%s2850_s30 + $0x188] sm:$0xff] %vm1622_vm4, %v1607_v2 }
 0x2a2   : > { %v985_v10 = vpop.f32.mrf.mxu1 }
 0x2a3   : > { %v1398_v5 = vpop.f32.mrf.mxu2  ;;  %v986_v14 = vadd.f32 %v2933_v4, %v985_v10  ;;  %v2286_v22 = vpop.eup %2285  ;;  %v269_v10 = vsel %vm238_vm0, %v2332_v9, 0.0 }
 0x2a4   : > { %v1399_v13 = vadd.f32 %v3178_v24, %v1398_v5  ;;  %v1458_v16 = vpop.f32.mrf.mxu3  ;;  %v1205_v33 = vsel %vm572_vm2, %v2286_v22, %v1141_v27  ;;  %v1547_v5 = vsel %vm1493_vm3, %v292_v59, 1.0 }
 0x2a5   : > { %2287 = vtanh.f32 %v986_v14  ;;  %v1459_v18 = vadd.f32 %v3178_v24, %v1458_v16  ;;  %v1142_v28 = vmax.f32 %v986_v14, 0.0  ;;  %v2333_v16 = vld [vmem:[%s2425_s5 + $0x1b0] sm:$0xff] }
 0x2a6   : > { %v1584_v15 = vmul.f32 %v1520_v6, %v1399_v13 }
 0x2a7   : > { %v1608_v21 = vmul.f32 %v1544_v17, %v1459_v18  ;;  %v293_v17 = vsel %vm238_vm0, %v2333_v16, 0.0 }
 0x2a8   : > { %1649 = vst.msk [vmem:[%s2850_s30 + $0xd0] sm:$0xff] %vm1622_vm4, %v1584_v15  ;;  %v1524_v15 = vsel %vm1493_vm3, %v269_v10, 1.0 }
 0x2a9   : > { %1673 = vst.msk [vmem:[%s2850_s30 + $0x190] sm:$0xff] %vm1622_vm4, %v1608_v21  ;;  %v1548_v21 = vsel %vm1493_vm3, %v293_v17, 1.0 }
 0x2aa   : > { %v988_v29 = vpop.f32.mrf.mxu1 }
 0x2ab   : > { %v1400_v45 = vpop.f32.mrf.mxu2  ;;  %v2288_v31 = vpop.eup %2287  ;;  %v989_v40 = vadd.f32 %v2933_v4, %v988_v29 }
 0x2ac   : > { %v1401_v30 = vadd.f32 %v3178_v24, %v1400_v45  ;;  %v1206_v34 = vsel %vm572_vm2, %v2288_v31, %v1142_v28  ;;  %v1460_v11 = vpop.f32.mrf.mxu3  ;;  %v2334_v45 = vld [vmem:[%s2425_s5 + $0xf8] sm:$0xff] }
 0x2ad   : > { %v1247_v36 = vpack.c.bf16 %v1206_v34, %v1205_v33  ;;  %v1461_v37 = vadd.f32 %v3178_v24, %v1460_v11  ;;  %2289 = vtanh.f32 %v989_v40  ;;  %v1143_v60 = vmax.f32 %v989_v40, 0.0  ;;  %v2335_v28 = vld [vmem:[%s2425_s5 + $0x1b8] sm:$0xff]  ;;  %v2336_v11 = vld [vmem:[%s2425_s5 + $0x100] sm:$0xff] }
 0x2ae   : > { %v1585_v32 = vmul.f32 %v1521_v23, %v1401_v30  ;;  %v270_v23 = vsel %vm238_vm0, %v2334_v45, 0.0  ;;  %v294_v29 = vsel %vm238_vm0, %v2335_v28, 0.0  ;;  %v295_v40 = vsel %vm238_vm0, %v2337_v39, 0.0 }
 0x2af   : > { %1442 = vmatmul.bf16.gmra.mxu2 %v1247_v36  ;;  %v1609_v41 = vmul.f32 %v1545_v35, %v1461_v37  ;;  %v1525_v27 = vsel %vm1493_vm3, %v270_v23, 1.0  ;;  %v1549_v33 = vsel %vm1493_vm3, %v294_v29, 1.0  ;;  %v271_v35 = vsel %vm238_vm0, %v2336_v11, 0.0  ;;  %v2345_v23 = vld [vmem:[%s2425_s5 + $0x1e0] sm:$0xff] }
 0x2b0   : > { %1650 = vst.msk [vmem:[%s2850_s30 + $0xd8] sm:$0xff] %vm1622_vm4, %v1585_v32  ;;  %v1526_v38 = vsel %vm1493_vm3, %v271_v35, 1.0  ;;  %v1550_v44 = vsel %vm1493_vm3, %v295_v40, 1.0  ;;  %v2347_v35 = vld [vmem:[%s2425_s5 + $0x1e8] sm:$0xff] }
 0x2b1   : > { %1674 = vst.msk [vmem:[%s2850_s30 + $0x198] sm:$0xff] %vm1622_vm4, %v1609_v41 }
 0x2b2   : > { %v990_v47 = vpop.f32.mrf.mxu1 }
 0x2b3   : > { %v1403_v42 = vpop.f32.mrf.mxu2  ;;  %v991_v49 = vadd.f32 %v2933_v4, %v990_v47  ;;  %v2290_v57 = vpop.eup %2289  ;;  %v1523_v4 = vsel %vm1493_vm3, %v268_v7, 1.0  ;;  %v2338_v47 = vld [vmem:[%s2425_s5 + $0x108] sm:$0xff] }
 0x2b4   : > { %v1404_v48 = vadd.f32 %v3178_v24, %v1403_v42  ;;  %v1463_v52 = vpop.f32.mrf.mxu3  ;;  %v1207_v1 = vsel %vm572_vm2, %v2290_v57, %v1143_v60 }
 0x2b5   : > { %2291 = vtanh.f32 %v991_v49  ;;  %v1464_v54 = vadd.f32 %v3178_v24, %v1463_v52  ;;  %v1144_v61 = vmax.f32 %v991_v49, 0.0 }
 0x2b6   : > { %v1586_v51 = vmul.f32 %v1522_v43, %v1404_v48  ;;  %v272_v48 = vsel %vm238_vm0, %v2338_v47, 0.0 }
 0x2b7   : > { %v1610_v56 = vmul.f32 %v1546_v53, %v1464_v54  ;;  %v1527_v52 = vsel %vm1493_vm3, %v272_v48, 1.0  ;;  %v2339_v53 = vld [vmem:[%s2425_s5 + $0x1c8] sm:$0xff]  ;;  %v2349_v48 = vld [vmem:[%s2425_s5 + $0x1f0] sm:$0xff] }
 0x2b8   : > { %1651 = vst.msk [vmem:[%s2850_s30 + $0xe0] sm:$0xff] %vm1622_vm4, %v1586_v51  ;;  %v296_v54 = vsel %vm238_vm0, %v2339_v53, 0.0 }
 0x2b9   : > { %1675 = vst.msk [vmem:[%s2850_s30 + $0x1a0] sm:$0xff] %vm1622_vm4, %v1610_v56  ;;  %v1551_v57 = vsel %vm1493_vm3, %v296_v54, 1.0 }
 0x2bb   : > { %v1405_v58 = vpop.f32.mrf.mxu2  ;;  %v2292_v63 = vpop.eup %2291 }
 0x2bc   : > { %v1406_v62 = vadd.f32 %v3178_v24, %v1405_v58  ;;  %v1208_v2 = vsel %vm572_vm2, %v2292_v63, %v1144_v61  ;;  %v1465_v3 = vpop.f32.mrf.mxu3 }
 0x2bd   : > { %v1248_v6 = vpack.c.bf16 %v1208_v2, %v1207_v1  ;;  %v1466_v8 = vadd.f32 %v3178_v24, %v1465_v3 }
 0x2be   : > { %v1587_v0 = vmul.f32 %v1523_v4, %v1406_v62  ;;  %v2340_v4 = vld [vmem:[%s2425_s5 + $0x110] sm:$0xff] }
 0x2bf   : > { %1447 = vmatmul.bf16.gmra.mxu2 %v1248_v6  ;;  %v1611_v13 = vmul.f32 %v1547_v5, %v1466_v8  ;;  %v273_v12 = vsel %vm238_vm0, %v2340_v4, 0.0  ;;  %v2341_v62 = vld [vmem:[%s2425_s5 + $0x1d0] sm:$0xff]  ;;  %v2342_v6 = vld [vmem:[%s2425_s5 + $0x118] sm:$0xff] }
 0x2c0   : > { %1652 = vst.msk [vmem:[%s2850_s30 + $0xe8] sm:$0xff] %vm1622_vm4, %v1587_v0  ;;  %v1528_v61 = vsel %vm1493_vm3, %v273_v12, 1.0  ;;  %v297_v63 = vsel %vm238_vm0, %v2341_v62, 0.0  ;;  %v274_v8 = vsel %vm238_vm0, %v2342_v6, 0.0  ;;  %v2351_v12 = vld [vmem:[%s2425_s5 + $0x1f8] sm:$0xff] }
 0x2c1   : > { %1676 = vst.msk [vmem:[%s2850_s30 + $0x1a8] sm:$0xff] %vm1622_vm4, %v1611_v13  ;;  %v1552_v3 = vsel %vm1493_vm3, %v297_v63, 1.0  ;;  %v1529_v13 = vsel %vm1493_vm3, %v274_v8, 1.0 }
 0x2c3   : > { %v1408_v14 = vpop.f32.mrf.mxu2 }
 0x2c4   : > { %v1409_v18 = vadd.f32 %v3178_v24, %v1408_v14  ;;  %v1468_v20 = vpop.f32.mrf.mxu3  ;;  %v2343_v14 = vld [vmem:[%s2425_s5 + $0x1d8] sm:$0xff] }
 0x2c5   : > { %v1469_v22 = vadd.f32 %v3178_v24, %v1468_v20 }
 0x2c6   : > { %v1588_v19 = vmul.f32 %v1524_v15, %v1409_v18  ;;  %v298_v15 = vsel %vm238_vm0, %v2343_v14, 0.0  ;;  %v2353_v14 = vld [vmem:[%s2425_s5 + $0x148] sm:$0xff] }
 0x2c7   : > { %v1612_v25 = vmul.f32 %v1548_v21, %v1469_v22  ;;  %v2344_v21 = vld [vmem:[%s2425_s5 + $0x120] sm:$0xff] }
 0x2c8   : > { %1653 = vst.msk [vmem:[%s2850_s30 + $0xf0] sm:$0xff] %vm1622_vm4, %v1588_v19  ;;  %v1553_v19 = vsel %vm1493_vm3, %v298_v15, 1.0  ;;  %v275_v22 = vsel %vm238_vm0, %v2344_v21, 0.0  ;;  %v280_v15 = vsel %vm238_vm0, %v2353_v14, 0.0 }
 0x2c9   : > { %1677 = vst.msk [vmem:[%s2850_s30 + $0x1b0] sm:$0xff] %vm1622_vm4, %v1612_v25  ;;  %v299_v25 = vsel %vm238_vm0, %v2345_v23, 0.0 }
 0x2cb   : > { %v1410_v26 = vpop.f32.mrf.mxu2 }
 0x2cc   : > { %v1411_v30 = vadd.f32 %v3178_v24, %v1410_v26  ;;  %v1470_v32 = vpop.f32.mrf.mxu3 }
 0x2cd   : > { %v1471_v34 = vadd.f32 %v3178_v24, %v1470_v32 }
 0x2ce   : > { %v1589_v31 = vmul.f32 %v1525_v27, %v1411_v30  ;;  %v1530_v27 = vsel %vm1493_vm3, %v275_v22, 1.0  ;;  %v1554_v30 = vsel %vm1493_vm3, %v299_v25, 1.0 }
 0x2cf   : > { %v1613_v36 = vmul.f32 %v1549_v33, %v1471_v34  ;;  %v2346_v33 = vld [vmem:[%s2425_s5 + $0x128] sm:$0xff] }
 0x2d0   : > { %1654 = vst.msk [vmem:[%s2850_s30 + $0xf8] sm:$0xff] %vm1622_vm4, %v1589_v31  ;;  %v276_v34 = vsel %vm238_vm0, %v2346_v33, 0.0 }
 0x2d1   : > { %1678 = vst.msk [vmem:[%s2850_s30 + $0x1b8] sm:$0xff] %vm1622_vm4, %v1613_v36  ;;  %v300_v36 = vsel %vm238_vm0, %v2347_v35, 0.0 }
 0x2d3   : > { %v1413_v37 = vpop.f32.mrf.mxu2 }
 0x2d4   : > { %v1414_v41 = vadd.f32 %v3178_v24, %v1413_v37  ;;  %v1473_v43 = vpop.f32.mrf.mxu3 }
 0x2d5   : > { %v1474_v46 = vadd.f32 %v3178_v24, %v1473_v43 }
 0x2d6   : > { %v1590_v42 = vmul.f32 %v1526_v38, %v1414_v41  ;;  %v1531_v38 = vsel %vm1493_vm3, %v276_v34, 1.0  ;;  %v1555_v41 = vsel %vm1493_vm3, %v300_v36, 1.0 }
 0x2d7   : > { %v1614_v49 = vmul.f32 %v1550_v44, %v1474_v46  ;;  %v2348_v44 = vld [vmem:[%s2425_s5 + $0x130] sm:$0xff] }
 0x2d8   : > { %1655 = vst.msk [vmem:[%s2850_s30 + $0x100] sm:$0xff] %vm1622_vm4, %v1590_v42  ;;  %v277_v46 = vsel %vm238_vm0, %v2348_v44, 0.0 }
 0x2d9   : > { %1679 = vst.msk [vmem:[%s2850_s30 + $0x1c0] sm:$0xff] %vm1622_vm4, %v1614_v49  ;;  %v301_v49 = vsel %vm238_vm0, %v2349_v48, 0.0 }
 0x2db   : > { %v1415_v51 = vpop.f32.mrf.mxu2 }
 0x2dc   : > { %v1416_v55 = vadd.f32 %v3178_v24, %v1415_v51  ;;  %v1475_v56 = vpop.f32.mrf.mxu3 }
 0x2dd   : > { %v1476_v58 = vadd.f32 %v3178_v24, %v1475_v56 }
 0x2de   : > { %v1591_v7 = vmul.f32 %v1527_v52, %v1416_v55  ;;  %v1532_v52 = vsel %vm1493_vm3, %v277_v46, 1.0  ;;  %v1556_v55 = vsel %vm1493_vm3, %v301_v49, 1.0 }
 0x2df   : > { %v1615_v59 = vmul.f32 %v1551_v57, %v1476_v58  ;;  %v2350_v57 = vld [vmem:[%s2425_s5 + $0x138] sm:$0xff] }
 0x2e0   : > { %1656 = vst.msk [vmem:[%s2850_s30 + $0x108] sm:$0xff] %vm1622_vm4, %v1591_v7  ;;  %v278_v58 = vsel %vm238_vm0, %v2350_v57, 0.0 }
 0x2e1   : > { %1680 = vst.msk [vmem:[%s2850_s30 + $0x1c8] sm:$0xff] %vm1622_vm4, %v1615_v59  ;;  %v302_v59 = vsel %vm238_vm0, %v2351_v12, 0.0 }
 0x2e3   : > { %v1418_v60 = vpop.f32.mrf.mxu2 }
 0x2e4   : > { %v1419_v0 = vadd.f32 %v3178_v24, %v1418_v60  ;;  %v1478_v2 = vpop.f32.mrf.mxu3 }
 0x2e5   : > { %v1479_v5 = vadd.f32 %v3178_v24, %v1478_v2 }
 0x2e6   : > { %v1592_v1 = vmul.f32 %v1528_v61, %v1419_v0  ;;  %v1533_v61 = vsel %vm1493_vm3, %v278_v58, 1.0  ;;  %v1557_v0 = vsel %vm1493_vm3, %v302_v59, 1.0 }
 0x2e7   : > { %v1616_v9 = vmul.f32 %v1552_v3, %v1479_v5  ;;  %v2352_v3 = vld [vmem:[%s2425_s5 + $0x140] sm:$0xff] }
 0x2e8   : > { %1657 = vst.msk [vmem:[%s2850_s30 + $0x110] sm:$0xff] %vm1622_vm4, %v1592_v1  ;;  %v279_v5 = vsel %vm238_vm0, %v2352_v3, 0.0 }
 0x2e9   : > { %1681 = vst.msk [vmem:[%s2850_s30 + $0x1d0] sm:$0xff] %vm1622_vm4, %v1616_v9  ;;  %v1534_v9 = vsel %vm1493_vm3, %v279_v5, 1.0 }
 0x2eb   : > { %v1420_v10 = vpop.f32.mrf.mxu2 }
 0x2ec   : > { %v1421_v16 = vadd.f32 %v3178_v24, %v1420_v10  ;;  %v1480_v18 = vpop.f32.mrf.mxu3 }
 0x2ed   : > { %v1481_v20 = vadd.f32 %v3178_v24, %v1480_v18 }
 0x2ee   : > { %v1593_v17 = vmul.f32 %v1529_v13, %v1421_v16 }
 0x2ef   : > { %v1617_v45 = vmul.f32 %v1553_v19, %v1481_v20  ;;  %v2354_v20 = vld [vmem:[%s2425_s5 + $0x150] sm:$0xff] }
 0x2f0   : > { %1658 = vst.msk [vmem:[%s2850_s30 + $0x118] sm:$0xff] %vm1622_vm4, %v1593_v17  ;;  %v1535_v17 = vsel %vm1493_vm3, %v280_v15, 1.0  ;;  %v281_v21 = vsel %vm238_vm0, %v2354_v20, 0.0 }
 0x2f1   : > { %1682 = vst.msk [vmem:[%s2850_s30 + $0x1d8] sm:$0xff] %vm1622_vm4, %v1617_v45  ;;  %v1536_v45 = vsel %vm1493_vm3, %v281_v21, 1.0 }
 0x2f3   : > { %v1423_v26 = vpop.f32.mrf.mxu2 }
 0x2f4   : > { %v1424_v28 = vadd.f32 %v3178_v24, %v1423_v26  ;;  %v1483_v29 = vpop.f32.mrf.mxu3  ;;  %v2355_v26 = vld [vmem:[%s2425_s5 + $0x158] sm:$0xff] }
 0x2f5   : > { %v1484_v32 = vadd.f32 %v3178_v24, %v1483_v29 }
 0x2f6   : > { %v1594_v31 = vmul.f32 %v1530_v27, %v1424_v28  ;;  %v282_v27 = vsel %vm238_vm0, %v2355_v26, 0.0 }
 0x2f7   : > { %v1618_v11 = vmul.f32 %v1554_v30, %v1484_v32  ;;  %v1537_v29 = vsel %vm1493_vm3, %v282_v27, 1.0  ;;  %v2356_v32 = vld [vmem:[%s2425_s5 + $0x160] sm:$0xff] }
 0x2f8   : > { %1659 = vst.msk [vmem:[%s2850_s30 + $0x120] sm:$0xff] %vm1622_vm4, %v1594_v31  ;;  %v283_v33 = vsel %vm238_vm0, %v2356_v32, 0.0 }
 0x2f9   : > { %1683 = vst.msk [vmem:[%s2850_s30 + $0x1e0] sm:$0xff] %vm1622_vm4, %v1618_v11  ;;  %v1538_v11 = vsel %vm1493_vm3, %v283_v33, 1.0 }
 0x2fb   : > { %v1425_v37 = vpop.f32.mrf.mxu2 }
 0x2fc   : > { %v1426_v39 = vadd.f32 %v3178_v24, %v1425_v37  ;;  %v1485_v40 = vpop.f32.mrf.mxu3  ;;  %v2357_v37 = vld [vmem:[%s2425_s5 + $0x168] sm:$0xff] }
 0x2fd   : > { %v1486_v43 = vadd.f32 %v3178_v24, %v1485_v40 }
 0x2fe   : > { %v1595_v42 = vmul.f32 %v1531_v38, %v1426_v39  ;;  %v284_v38 = vsel %vm238_vm0, %v2357_v37, 0.0 }
 0x2ff   : > { %v1619_v47 = vmul.f32 %v1555_v41, %v1486_v43  ;;  %v1539_v40 = vsel %vm1493_vm3, %v284_v38, 1.0  ;;  %v2358_v43 = vld [vmem:[%s2425_s5 + $0x170] sm:$0xff] }
 0x300   : > { %1660 = vst.msk [vmem:[%s2850_s30 + $0x128] sm:$0xff] %vm1622_vm4, %v1595_v42  ;;  %v285_v44 = vsel %vm238_vm0, %v2358_v43, 0.0 }
 0x301   : > { %1684 = vst.msk [vmem:[%s2850_s30 + $0x1e8] sm:$0xff] %vm1622_vm4, %v1619_v47  ;;  %v1540_v47 = vsel %vm1493_vm3, %v285_v44, 1.0 }
 0x303   : > { %v1428_v51 = vpop.f32.mrf.mxu2 }
 0x304   : > { %v1429_v53 = vadd.f32 %v3178_v24, %v1428_v51  ;;  %v1488_v54 = vpop.f32.mrf.mxu3  ;;  %v2359_v51 = vld [vmem:[%s2425_s5 + $0x178] sm:$0xff] }
 0x305   : > { %v1489_v56 = vadd.f32 %v3178_v24, %v1488_v54 }
 0x306   : > { %v1596_v7 = vmul.f32 %v1532_v52, %v1429_v53  ;;  %v286_v52 = vsel %vm238_vm0, %v2359_v51, 0.0 }
 0x307   : > { %v1620_v4 = vmul.f32 %v1556_v55, %v1489_v56  ;;  %v1541_v54 = vsel %vm1493_vm3, %v286_v52, 1.0 }
 0x308   : > { %1661 = vst.msk [vmem:[%s2850_s30 + $0x130] sm:$0xff] %vm1622_vm4, %v1596_v7 }
 0x309   : > { %1685 = vst.msk [vmem:[%s2850_s30 + $0x1f0] sm:$0xff] %vm1622_vm4, %v1620_v4 }
 0x30b   : > { %v1430_v60 = vpop.f32.mrf.mxu2 }
 0x30c   : > { %v1431_v62 = vadd.f32 %v3178_v24, %v1430_v60  ;;  %v1490_v63 = vpop.f32.mrf.mxu3 }
 0x30d   : > { %v1491_v2 = vadd.f32 %v3178_v24, %v1490_v63 }
 0x30e   : > { %v1597_v1 = vmul.f32 %v1533_v61, %v1431_v62 }
 0x30f   : > { %v1621_v6 = vmul.f32 %v1557_v0, %v1491_v2 }
 0x310   : > { %1662 = vst.msk [vmem:[%s2850_s30 + $0x138] sm:$0xff] %vm1622_vm4, %v1597_v1 }
 0x311   : > { %1686 = vst.msk [vmem:[%s2850_s30 + $0x1f8] sm:$0xff] %vm1622_vm4, %v1621_v6 }
 0x313   : > { %v1433_v8 = vpop.f32.mrf.mxu2 }
 0x314   : > { %v1434_v10 = vadd.f32 %v3178_v24, %v1433_v8 }
 0x316   : > { %v1598_v13 = vmul.f32 %v1534_v9, %v1434_v10 }
 0x318   : > { %1663 = vst.msk [vmem:[%s2850_s30 + $0x140] sm:$0xff] %vm1622_vm4, %v1598_v13 }
 0x31b   : > { %v1435_v16 = vpop.f32.mrf.mxu2 }
 0x31c   : > { %v1436_v18 = vadd.f32 %v3178_v24, %v1435_v16 }
 0x31e   : > { %v1599_v19 = vmul.f32 %v1535_v17, %v1436_v18 }
 0x320   : > { %1664 = vst.msk [vmem:[%s2850_s30 + $0x148] sm:$0xff] %vm1622_vm4, %v1599_v19 }
 0x323   : > { %v1438_v22 = vpop.f32.mrf.mxu2 }
 0x324   : > { %v1439_v23 = vadd.f32 %v3178_v24, %v1438_v22 }
 0x326   : > { %v1600_v25 = vmul.f32 %v1536_v45, %v1439_v23 }
 0x328   : > { %1665 = vst.msk [vmem:[%s2850_s30 + $0x150] sm:$0xff] %vm1622_vm4, %v1600_v25 }
 0x32b   : > { %v1440_v28 = vpop.f32.mrf.mxu2 }
 0x32c   : > { %v1441_v30 = vadd.f32 %v3178_v24, %v1440_v28 }
 0x32e   : > { %v1601_v31 = vmul.f32 %v1537_v29, %v1441_v30 }
 0x330   : > { %1666 = vst.msk [vmem:[%s2850_s30 + $0x158] sm:$0xff] %vm1622_vm4, %v1601_v31 }
 0x333   : > { %v1443_v34 = vpop.f32.mrf.mxu2 }
 0x334   : > { %v1444_v35 = vadd.f32 %v3178_v24, %v1443_v34 }
 0x336   : > { %v1602_v36 = vmul.f32 %v1538_v11, %v1444_v35 }
 0x338   : > { %1667 = vst.msk [vmem:[%s2850_s30 + $0x160] sm:$0xff] %vm1622_vm4, %v1602_v36 }
 0x33b   : > { %v1445_v39 = vpop.f32.mrf.mxu2 }
 0x33c   : > { %v1446_v41 = vadd.f32 %v3178_v24, %v1445_v39 }
 0x33e   : > { %v1603_v42 = vmul.f32 %v1539_v40, %v1446_v41 }
 0x340   : > { %1668 = vst.msk [vmem:[%s2850_s30 + $0x168] sm:$0xff] %vm1622_vm4, %v1603_v42 }
 0x343   : > { %v1448_v46 = vpop.f32.mrf.mxu2 }
 0x344   : > { %v1449_v48 = vadd.f32 %v3178_v24, %v1448_v46 }
 0x346   : > { %v1604_v49 = vmul.f32 %v1540_v47, %v1449_v48 }
 0x348   : > { %1669 = vst.msk [vmem:[%s2850_s30 + $0x170] sm:$0xff] %vm1622_vm4, %v1604_v49 }
 0x34b   : > { %v1450_v53 = vpop.f32.mrf.mxu2 }
 0x34c   : > { %v1451_v55 = vadd.f32 %v3178_v24, %v1450_v53 }
 0x34e   : > { %v1605_v7 = vmul.f32 %v1541_v54, %v1451_v55 }
 0x350   : > { %1670 = vst.msk [vmem:[%s2850_s30 + $0x178] sm:$0xff] %vm1622_vm4, %v1605_v7 }
 0x351 PF: > { %s13_s12 = sadd.s32 1, %s2366_s12  }
 0x352   : > { %p10_p4 = scmp.ge.s32.totalorder %s13_s12, 6  }
 0x354   :  { %12 = sbr.rel (!%p10_p4) target bundleno = 1 (0x1), region = 64 }

</bundles_post_ra>
